<compile_context>
chip_gen: v6e
topology: v6e:2x2x1
jax: 0.10.0
libtpu: 0.0.40
codegen_flags: <defaults>
</compile_context>

<pallas_src>
import math

import jax
import jax.numpy as jnp
import numpy as np
from jax import lax
from jax.experimental import pallas as pl
from jax.experimental.pallas import tpu as pltpu

_BN_EPS = 1e-5
# MXU operand dtype (bf16 native on v6e/v7x, fine on v5e); accumulation is f32.
_MXU_DTYPE = jnp.bfloat16


def _erf(x):
    # Abramowitz & Stegun 7.1.26 polynomial, |abs err| < 1.5e-7 (f32-accurate).
    # Exact-erf GELU semantics kept (torch nn.GELU default); exp + reciprocal
    # both ride the EUP slot.
    a1, a2, a3, a4, a5 = (0.254829592, -0.284496736, 1.421413741,
                          -1.453152027, 1.061405429)
    p = 0.3275911
    s = jnp.where(x >= 0.0, 1.0, -1.0)
    z = jnp.abs(x)
    t = pl.reciprocal(1.0 + p * z, approx=True)
    poly = ((((a5 * t + a4) * t + a3) * t + a2) * t + a1) * t
    return s * (1.0 - poly * jnp.exp(-z * z))


def _gelu_exact(x):
    # torch nn.GELU() default (approximate='none'): 0.5*x*(1+erf(x/sqrt(2)))
    # TODO(synk): run this (and the BN scale/shift) in bf16 on v6e/v7x; v5e has
    # no bf16 VPU/EUP so the generic path stays f32.
    return 0.5 * x * (1.0 + _erf(x * (1.0 / math.sqrt(2.0))))


def _banded_rhs_cat(w_oihw, width):
    """3x3 conv weights (O, I, 3, 3) -> concatenated banded RHS (3*W*I, W*O).

    Block dy of the K axis satisfies
      R[dy][(j2, ci), (j, co)] = w[co, ci, dy, dx]  when j2 == j + dx - 1,
    so the zero W-padding of the conv is handled by the band itself (no
    W-padded activation buffer anywhere), and the 3 dy taps become a single
    K = 3*W*I matmul against an LHS of the 3 H-shifted row copies."""
    o, i = w_oihw.shape[0], w_oihw.shape[1]
    mats = []
    for dy in range(3):
        r = jnp.zeros((width * i, width * o), jnp.float32)
        for dx in range(3):
            band = jnp.eye(width, k=1 - dx, dtype=jnp.float32)
            r = r + jnp.kron(band, w_oihw[:, :, dy, dx].T.astype(jnp.float32))
        mats.append(r)
    return jnp.concatenate(mats, axis=0)


def downsample_forward(x_nchw, params, *, mxu_dtype=_MXU_DTYPE):
    """DownSample forward: (N, Cin, H, W) f32 -> (N, Cout, H/2, W/2) f32.

    Layout: activations are folded as (N*H, W*C) so the 128-lane axis is fully
    used (W*C = 128 here); each conv is one banded MXU matmul with K = 3*W*Cin.

    TODO(synk): for real DDPM sizes add a grid over N/H ("parallel" so v7x's
    two TensorCores both run) and make BN a two-pass / cross-core-accumulated
    reduction; re-derive the VMEM budget for v7x's 64 MiB per TC.
    TODO(synk): at large W*C switch to a C-on-lanes (padded to 128/256)
    formulation — the banded RHS has only 3/W non-zero C-blocks.
    TODO(synk): once a grid exists, give the constants (r1/r2, gamma/beta, sel)
    index_map -> (0, ...) BlockSpecs so they stay VMEM-resident across steps.
    TODO(synk): switch the one-pass E[x^2]-m^2 variance to a centered/two-pass
    form when activations get large (catastrophic cancellation risk).
    """
    w1, g1, b1, w2, g2, b2 = params
    n, cin, h, w = x_nchw.shape
    cout = w1.shape[0]
    assert h % 2 == 0 and w % 2 == 0, "MaxPool2d(2) needs even spatial dims"
    assert (w & (w - 1)) == 0, "lane roll-tree BN combine assumes W power of 2"
    nh = n * h
    assert nh % 4 == 0, "packed (two pooled rows per stored row) output"
    k1 = w * cin          # folded lane width of the conv1 input
    lanes = w * cout      # folded lane width of conv outputs (= 128 here)
    half = (w // 2) * cout
    inv_count = 1.0 / float(n * h * w)

    # ---- wrapper-side layout / constant prep (XLA, traced once under jit) ----
    # NCHW -> NHWC -> fold (W, C) onto lanes; build the K-concatenated conv1
    # LHS from the three H-shifted (zero-padded) row copies.
    x_f = jnp.transpose(x_nchw, (0, 2, 3, 1)).reshape(n, h, k1)
    xp = jnp.pad(x_f, ((0, 0), (1, 1), (0, 0)))
    lhs1 = jnp.concatenate([xp[:, 0:h], xp[:, 1:h + 1], xp[:, 2:h + 2]],
                           axis=-1).reshape(nh, 3 * k1).astype(mxu_dtype)
    r1 = _banded_rhs_cat(w1, w).astype(mxu_dtype)       # (3*W*Cin,  W*Cout)
    r2 = _banded_rhs_cat(w2, w).astype(mxu_dtype)       # (3*W*Cout, W*Cout)
    g1f = jnp.tile(g1.astype(jnp.float32), w).reshape(1, lanes)
    b1f = jnp.tile(b1.astype(jnp.float32), w).reshape(1, lanes)
    g2f = jnp.tile(g2.astype(jnp.float32), w).reshape(1, lanes)
    b2f = jnp.tile(b2.astype(jnp.float32), w).reshape(1, lanes)
    # Fused 0/1 W-pool selection: columns [0, half) pick even W columns,
    # [half, 2*half) pick odd W columns (0/1 exact in bf16).
    eye_c = np.eye(cout, dtype=np.float32)
    sel_np = np.concatenate(
        [np.kron(np.eye(w, dtype=np.float32)[:, 0::2], eye_c),
         np.kron(np.eye(w, dtype=np.float32)[:, 1::2], eye_c)], axis=1)
    sel = jnp.asarray(sel_np, dtype=mxu_dtype)          # (lanes, lanes)

    def kernel(lhs1_ref, r1_ref, g1_ref, b1_ref, r2_ref, g2_ref, b2_ref,
               sel_ref, o_ref):

        def bn(acc, gamma, beta):
            # One-pass batch statistics (training mode, biased var, eps=1e-5).
            # Per-channel combine over the folded W groups is an XLU lane
            # roll-and-add tree; the result is already broadcast over lanes.
            s12 = jnp.concatenate(
                [jnp.sum(acc, axis=0, keepdims=True),
                 jnp.sum(acc * acc, axis=0, keepdims=True)], axis=0)
            shift = cout
            while shift < lanes:
                s12 = s12 + pltpu.roll(s12, shift=shift, axis=1)
                shift *= 2
            mean = s12[0:1, :] * inv_count
            ex2 = s12[1:2, :] * inv_count
            var = ex2 - mean * mean
            scale = lax.rsqrt(var + _BN_EPS) * gamma
            return acc * scale + (beta - mean * scale)

        # ---- conv1 (one K=3*W*Cin MXU matmul) -> BN -> GELU ----
        acc1 = jnp.dot(lhs1_ref[...], r1_ref[...],
                       preferred_element_type=jnp.float32)
        h1 = _gelu_exact(bn(acc1, g1_ref[...], b1_ref[...]))

        # ---- conv2 LHS: (y-1, y, y+1) rows of h1 concatenated along K, with
        #      image-boundary rows zeroed (the conv's H padding).  The W halo
        #      lives inside r2's band.  No padded scratch, no unaligned tiles.
        h1b = h1.astype(r2_ref.dtype)
        zrow = jnp.zeros((1, lanes), h1b.dtype)
        prev = jnp.concatenate([zrow, h1b[:nh - 1, :]], axis=0)   # row y-1
        nxt = jnp.concatenate([h1b[1:, :], zrow], axis=0)         # row y+1
        y_in_img = lax.broadcasted_iota(jnp.int32, (nh, lanes), 0) % h
        prev = jnp.where(y_in_img == 0, jnp.zeros_like(prev), prev)
        nxt = jnp.where(y_in_img == h - 1, jnp.zeros_like(nxt), nxt)
        lhs2 = jnp.concatenate([prev, h1b, nxt], axis=1)          # (nh, 3*lanes)

        # ---- conv2 -> BN -> GELU ----
        acc2 = jnp.dot(lhs2, r2_ref[...], preferred_element_type=jnp.float32)
        h2 = _gelu_exact(bn(acc2, g2_ref[...], b2_ref[...]))

        # ---- MaxPool2d(2, 2) ----
        # H pairs: leading-dim reshape + sublane max (rows compact for free,
        # no O((N*H)^2) row-selection matrices).
        hp = jnp.max(h2.reshape(nh // 2, 2, lanes), axis=1)       # (nh/2, lanes)
        # W pairs: one bf16 [even | odd] lane-selection matmul, max the halves.
        wp = jnp.dot(hp.astype(sel_ref.dtype), sel_ref[...],
                     preferred_element_type=jnp.float32)          # (nh/2, lanes)
        pooled = jnp.maximum(wp[:, :half], wp[:, half:])          # (nh/2, half)
        # Lane-dense packed store: stored row q = [pooled[q] | pooled[q+nh/4]]
        # -> one unmasked (8, 128) f32 tile; un-packed in the wrapper.
        o_ref[...] = jnp.concatenate(
            [pooled[:nh // 4, :], pooled[nh // 4:, :]], axis=1)

    out_flat = pl.pallas_call(
        kernel,
        out_shape=jax.ShapeDtypeStruct((nh // 4, 2 * half), jnp.float32),
        in_specs=[pl.BlockSpec(memory_space=pltpu.MemorySpace.VMEM)] * 8,
        out_specs=pl.BlockSpec(memory_space=pltpu.MemorySpace.VMEM),
        compiler_params=pltpu.CompilerParams(
            # actual footprint is well under 1 MiB; keep an explicit, modest
            # limit that also fits v7x's 64 MiB physical VMEM per TC.
            vmem_limit_bytes=8 * 1024 * 1024),
    )(lhs1, r1, g1f, b1f, r2, g2f, b2f, sel)

    # un-pack: (nh/4, 2*half) -> (nh/2, half) -> (N, H/2, W/2, C) -> NCHW
    pooled = jnp.concatenate([out_flat[:, :half], out_flat[:, half:]], axis=0)
    out = pooled.reshape(n, h // 2, w // 2, cout)
    return jnp.transpose(out, (0, 3, 1, 2))


def _reference(x_nchw, params, mxu_dtype=jnp.float32):
    """Pure-JAX reference (PyTorch semantics).  mxu_dtype=bfloat16 mimics
    feeding the MXU bf16 operands (f32 accumulation), matching the kernel."""
    w1, g1, b1, w2, g2, b2 = params

    def q(a):
        return a.astype(mxu_dtype).astype(jnp.float32)

    def conv(x, wgt):
        return lax.conv_general_dilated(
            q(x), q(wgt), window_strides=(1, 1), padding=((1, 1), (1, 1)),
            dimension_numbers=("NCHW", "OIHW", "NCHW"))

    def bn(x, g, b):
        mean = jnp.mean(x, axis=(0, 2, 3), keepdims=True)
        var = jnp.mean((x - mean) ** 2, axis=(0, 2, 3), keepdims=True)
        return ((x - mean) * lax.rsqrt(var + _BN_EPS) * g.reshape(1, -1, 1, 1)
                + b.reshape(1, -1, 1, 1))

    h1 = jax.nn.gelu(bn(conv(x_nchw, w1), g1, b1), approximate=False)
    h2 = jax.nn.gelu(bn(conv(h1, w2), g2, b2), approximate=False)
    # the kernel feeds h2 (bf16) to the pooling selection matmul; rounding is
    # monotonic so applying it before the 2x2 max mirrors the kernel exactly.
    h2 = q(h2)
    nb, c, hh, ww = h2.shape
    return jnp.max(h2.reshape(nb, c, hh // 2, 2, ww // 2, 2), axis=(3, 5))


if __name__ == "__main__":
    key = jax.random.PRNGKey(0)
    ks = jax.random.split(key, 7)

    N, Cin, Cout, H, W = 2, 4, 8, 16, 16
    x = jax.random.normal(ks[0], (N, Cin, H, W), jnp.float32)

    # deterministic synthetic parameters (shapes follow the module __init__)
    w1 = 0.2 * jax.random.normal(ks[1], (Cout, Cin, 3, 3), jnp.float32)
    w2 = 0.2 * jax.random.normal(ks[2], (Cout, Cout, 3, 3), jnp.float32)
    g1 = 1.0 + 0.1 * jax.random.normal(ks[3], (Cout,), jnp.float32)
    b1 = 0.1 * jax.random.normal(ks[4], (Cout,), jnp.float32)
    g2 = 1.0 + 0.1 * jax.random.normal(ks[5], (Cout,), jnp.float32)
    b2 = 0.1 * jax.random.normal(ks[6], (Cout,), jnp.float32)
    params = (w1, g1, b1, w2, g2, b2)

    out = jax.block_until_ready(jax.jit(downsample_forward)(x, params))
    assert out.shape == (N, Cout, H // 2, W // 2)

    # Tight check vs a reference whose convs/pool see the same bf16-rounded
    # operands as the kernel's MXU path (f32 accumulation in both); residual
    # gap is the approx-reciprocal erf (~1e-3) and accumulation order.
    ref_match = jax.block_until_ready(
        _reference(x, params, mxu_dtype=_MXU_DTYPE))
    np.testing.assert_allclose(np.asarray(out), np.asarray(ref_match),
                               atol=3e-2, rtol=3e-2)
    # Loose sanity check vs the exact-f32 PyTorch-semantics reference; the gap
    # is the bf16 MXU operand rounding (set _MXU_DTYPE=float32 for ~1e-3).
    ref_f32 = jax.block_until_ready(_reference(x, params))
    np.testing.assert_allclose(np.asarray(out), np.asarray(ref_f32),
                               atol=8e-2, rtol=8e-2)
    print("KERNEL_OK")
</pallas_src>

<mosaic_0001>
module attributes {stable_mosaic.version = 11 : i64} {
  func.func @kernel(%arg0: memref<32x192xbf16, #tpu.memory_space<vmem>>, %arg1: memref<192x128xbf16, #tpu.memory_space<vmem>>, %arg2: memref<1x128xf32, #tpu.memory_space<vmem>>, %arg3: memref<1x128xf32, #tpu.memory_space<vmem>>, %arg4: memref<384x128xbf16, #tpu.memory_space<vmem>>, %arg5: memref<1x128xf32, #tpu.memory_space<vmem>>, %arg6: memref<1x128xf32, #tpu.memory_space<vmem>>, %arg7: memref<128x128xbf16, #tpu.memory_space<vmem>>, %arg8: memref<8x128xf32, #tpu.memory_space<vmem>>) attributes {dimension_semantics = [], scalar_prefetch = 0 : i64, scratch_operands = 0 : i64, tpu.core_type = #tpu.core_type<tc>} {
    %c0 = arith.constant 0 : index
    %c0_0 = arith.constant 0 : index
    %0 = vector.load %arg0[%c0, %c0_0] : memref<32x192xbf16, #tpu.memory_space<vmem>>, vector<32x192xbf16>
    %c0_1 = arith.constant 0 : index
    %c0_2 = arith.constant 0 : index
    %1 = vector.load %arg1[%c0_1, %c0_2] : memref<192x128xbf16, #tpu.memory_space<vmem>>, vector<192x128xbf16>
    %cst = arith.constant dense<0.000000e+00> : vector<32x128xf32>
    %2 = tpu.matmul %0, %1, %cst {dimension_numbers = #tpu.dot_dimension_numbers<[1], [0], [0], [1], [0, 0, 1, 1], [], []>} : vector<32x192xbf16>, vector<192x128xbf16>, vector<32x128xf32> -> vector<32x128xf32>
    %c0_3 = arith.constant 0 : index
    %c0_4 = arith.constant 0 : index
    %3 = vector.load %arg2[%c0_3, %c0_4] : memref<1x128xf32, #tpu.memory_space<vmem>>, vector<1x128xf32>
    %c0_5 = arith.constant 0 : index
    %c0_6 = arith.constant 0 : index
    %4 = vector.load %arg3[%c0_5, %c0_6] : memref<1x128xf32, #tpu.memory_space<vmem>>, vector<1x128xf32>
    %cst_7 = arith.constant dense<0.000000e+00> : vector<128xf32>
    %5 = vector.multi_reduction <add>, %2, %cst_7 [0] : vector<32x128xf32> to vector<128xf32>
    %6 = vector.shape_cast %5 : vector<128xf32> to vector<1x128xf32>
    %7 = arith.mulf %2, %2 : vector<32x128xf32>
    %cst_8 = arith.constant dense<0.000000e+00> : vector<128xf32>
    %8 = vector.multi_reduction <add>, %7, %cst_8 [0] : vector<32x128xf32> to vector<128xf32>
    %9 = vector.shape_cast %8 : vector<128xf32> to vector<1x128xf32>
    %10 = tpu.concatenate %6, %9 in 0 : vector<1x128xf32>, vector<1x128xf32> -> vector<2x128xf32>
    %c8_i32 = arith.constant 8 : i32
    %11 = tpu.dynamic_rotate %10 by %c8_i32 dim 1 : vector<2x128xf32>, i32 -> vector<2x128xf32>
    %12 = arith.addf %10, %11 : vector<2x128xf32>
    %c16_i32 = arith.constant 16 : i32
    %13 = tpu.dynamic_rotate %12 by %c16_i32 dim 1 : vector<2x128xf32>, i32 -> vector<2x128xf32>
    %14 = arith.addf %12, %13 : vector<2x128xf32>
    %c32_i32 = arith.constant 32 : i32
    %15 = tpu.dynamic_rotate %14 by %c32_i32 dim 1 : vector<2x128xf32>, i32 -> vector<2x128xf32>
    %16 = arith.addf %14, %15 : vector<2x128xf32>
    %c64_i32 = arith.constant 64 : i32
    %17 = tpu.dynamic_rotate %16 by %c64_i32 dim 1 : vector<2x128xf32>, i32 -> vector<2x128xf32>
    %18 = arith.addf %16, %17 : vector<2x128xf32>
    %19 = vector.extract_strided_slice %18 {offsets = [0, 0], sizes = [1, 128], strides = [1, 1]} : vector<2x128xf32> to vector<1x128xf32>
    %cst_9 = arith.constant 0.001953125 : f32
    %20 = vector.broadcast %cst_9 : f32 to vector<1x128xf32>
    %21 = arith.mulf %19, %20 : vector<1x128xf32>
    %22 = vector.extract_strided_slice %18 {offsets = [1, 0], sizes = [1, 128], strides = [1, 1]} : vector<2x128xf32> to vector<1x128xf32>
    %cst_10 = arith.constant 0.001953125 : f32
    %23 = vector.broadcast %cst_10 : f32 to vector<1x128xf32>
    %24 = arith.mulf %22, %23 : vector<1x128xf32>
    %25 = arith.mulf %21, %21 : vector<1x128xf32>
    %26 = arith.subf %24, %25 : vector<1x128xf32>
    %cst_11 = arith.constant 9.99999974E-6 : f32
    %27 = vector.broadcast %cst_11 : f32 to vector<1x128xf32>
    %28 = arith.addf %26, %27 : vector<1x128xf32>
    %29 = math.rsqrt %28 : vector<1x128xf32>
    %30 = arith.mulf %29, %3 : vector<1x128xf32>
    %31 = vector.broadcast %30 : vector<1x128xf32> to vector<32x128xf32>
    %32 = arith.mulf %2, %31 : vector<32x128xf32>
    %33 = arith.mulf %21, %30 : vector<1x128xf32>
    %34 = arith.subf %4, %33 : vector<1x128xf32>
    %35 = vector.broadcast %34 : vector<1x128xf32> to vector<32x128xf32>
    %36 = arith.addf %32, %35 : vector<32x128xf32>
    %cst_12 = arith.constant 5.000000e-01 : f32
    %37 = vector.broadcast %cst_12 : f32 to vector<32x128xf32>
    %38 = arith.mulf %37, %36 : vector<32x128xf32>
    %cst_13 = arith.constant 0.707106769 : f32
    %39 = vector.broadcast %cst_13 : f32 to vector<32x128xf32>
    %40 = arith.mulf %36, %39 : vector<32x128xf32>
    %cst_14 = arith.constant 0.000000e+00 : f32
    %41 = vector.broadcast %cst_14 : f32 to vector<32x128xf32>
    %42 = arith.cmpf oge, %40, %41 : vector<32x128xf32>
    %cst_15 = arith.constant 1.000000e+00 : f32
    %cst_16 = arith.constant -1.000000e+00 : f32
    %43 = vector.broadcast %cst_15 : f32 to vector<32x128xf32>
    %44 = vector.broadcast %cst_16 : f32 to vector<32x128xf32>
    %45 = arith.select %42, %43, %44 : vector<32x128xi1>, vector<32x128xf32>
    %46 = math.absf %40 : vector<32x128xf32>
    %cst_17 = arith.constant 0.327591091 : f32
    %47 = vector.broadcast %cst_17 : f32 to vector<32x128xf32>
    %48 = arith.mulf %47, %46 : vector<32x128xf32>
    %cst_18 = arith.constant 1.000000e+00 : f32
    %49 = vector.broadcast %cst_18 : f32 to vector<32x128xf32>
    %50 = arith.addf %49, %48 : vector<32x128xf32>
    %51 = tpu.reciprocal %50 {approx = true} : vector<32x128xf32> -> vector<32x128xf32>
    %cst_19 = arith.constant 1.06140542 : f32
    %52 = vector.broadcast %cst_19 : f32 to vector<32x128xf32>
    %53 = arith.mulf %52, %51 : vector<32x128xf32>
    %cst_20 = arith.constant -1.45315206 : f32
    %54 = vector.broadcast %cst_20 : f32 to vector<32x128xf32>
    %55 = arith.addf %53, %54 : vector<32x128xf32>
    %56 = arith.mulf %55, %51 : vector<32x128xf32>
    %cst_21 = arith.constant 1.42141378 : f32
    %57 = vector.broadcast %cst_21 : f32 to vector<32x128xf32>
    %58 = arith.addf %56, %57 : vector<32x128xf32>
    %59 = arith.mulf %58, %51 : vector<32x128xf32>
    %cst_22 = arith.constant -0.284496725 : f32
    %60 = vector.broadcast %cst_22 : f32 to vector<32x128xf32>
    %61 = arith.addf %59, %60 : vector<32x128xf32>
    %62 = arith.mulf %61, %51 : vector<32x128xf32>
    %cst_23 = arith.constant 0.254829586 : f32
    %63 = vector.broadcast %cst_23 : f32 to vector<32x128xf32>
    %64 = arith.addf %62, %63 : vector<32x128xf32>
    %65 = arith.mulf %64, %51 : vector<32x128xf32>
    %cst_24 = arith.constant 0.000000e+00 : f32
    %66 = vector.broadcast %cst_24 : f32 to vector<32x128xf32>
    %67 = arith.subf %66, %46 : vector<32x128xf32>
    %68 = arith.mulf %67, %46 : vector<32x128xf32>
    %69 = math.exp %68 : vector<32x128xf32>
    %70 = arith.mulf %65, %69 : vector<32x128xf32>
    %cst_25 = arith.constant 1.000000e+00 : f32
    %71 = vector.broadcast %cst_25 : f32 to vector<32x128xf32>
    %72 = arith.subf %71, %70 : vector<32x128xf32>
    %73 = arith.mulf %45, %72 : vector<32x128xf32>
    %cst_26 = arith.constant 1.000000e+00 : f32
    %74 = vector.broadcast %cst_26 : f32 to vector<32x128xf32>
    %75 = arith.addf %74, %73 : vector<32x128xf32>
    %76 = arith.mulf %38, %75 : vector<32x128xf32>
    %77 = arith.truncf %76 : vector<32x128xf32> to vector<32x128xbf16>
    %cst_27 = arith.constant 0.000000e+00 : bf16
    %78 = vector.broadcast %cst_27 : bf16 to vector<1x128xbf16>
    %79 = vector.extract_strided_slice %77 {offsets = [0, 0], sizes = [31, 128], strides = [1, 1]} : vector<32x128xbf16> to vector<31x128xbf16>
    %80 = tpu.concatenate %78, %79 in 0 : vector<1x128xbf16>, vector<31x128xbf16> -> vector<32x128xbf16>
    %81 = vector.extract_strided_slice %77 {offsets = [1, 0], sizes = [31, 128], strides = [1, 1]} : vector<32x128xbf16> to vector<31x128xbf16>
    %82 = tpu.concatenate %81, %78 in 0 : vector<31x128xbf16>, vector<1x128xbf16> -> vector<32x128xbf16>
    %83 = tpu.iota {dimensions = array<i32: 0>} : vector<32x128xi32>
    %c16_i32_28 = arith.constant 16 : i32
    %c0_i32 = arith.constant 0 : i32
    %84 = arith.cmpi eq, %c16_i32_28, %c0_i32 : i32
    %c1_i32 = arith.constant 1 : i32
    %85 = arith.select %84, %c1_i32, %c16_i32_28 : i32
    %86 = vector.broadcast %85 : i32 to vector<32x128xi32>
    %87 = arith.remsi %83, %86 : vector<32x128xi32>
    %c0_i32_29 = arith.constant 0 : i32
    %88 = vector.broadcast %c0_i32_29 : i32 to vector<32x128xi32>
    %89 = arith.cmpi ne, %87, %88 : vector<32x128xi32>
    %c0_i32_30 = arith.constant 0 : i32
    %90 = vector.broadcast %c0_i32_30 : i32 to vector<32x128xi32>
    %91 = arith.cmpi slt, %87, %90 : vector<32x128xi32>
    %c0_i32_31 = arith.constant 0 : i32
    %92 = arith.cmpi slt, %85, %c0_i32_31 : i32
    %93 = vector.broadcast %92 : i1 to vector<32x128xi1>
    %94 = vector.broadcast %93 : vector<32x128xi1> to vector<32x128xi1>
    %95 = arith.xori %91, %94 : vector<32x128xi1>
    %96 = arith.andi %95, %89 : vector<32x128xi1>
    %97 = vector.broadcast %85 : i32 to vector<32x128xi32>
    %98 = arith.addi %87, %97 : vector<32x128xi32>
    %99 = arith.select %96, %98, %87 : vector<32x128xi1>, vector<32x128xi32>
    %c0_i32_32 = arith.constant 0 : i32
    %100 = vector.broadcast %c0_i32_32 : i32 to vector<32x128xi32>
    %101 = arith.cmpi eq, %99, %100 : vector<32x128xi32>
    %cst_33 = arith.constant 0.000000e+00 : bf16
    %102 = vector.broadcast %cst_33 : bf16 to vector<32x128xbf16>
    %103 = arith.select %101, %102, %80 : vector<32x128xi1>, vector<32x128xbf16>
    %c15_i32 = arith.constant 15 : i32
    %104 = vector.broadcast %c15_i32 : i32 to vector<32x128xi32>
    %105 = arith.cmpi eq, %99, %104 : vector<32x128xi32>
    %cst_34 = arith.constant 0.000000e+00 : bf16
    %106 = vector.broadcast %cst_34 : bf16 to vector<32x128xbf16>
    %107 = arith.select %105, %106, %82 : vector<32x128xi1>, vector<32x128xbf16>
    %108 = tpu.concatenate %103, %77, %107 in 1 : vector<32x128xbf16>, vector<32x128xbf16>, vector<32x128xbf16> -> vector<32x384xbf16>
    %c0_35 = arith.constant 0 : index
    %c0_36 = arith.constant 0 : index
    %109 = vector.load %arg4[%c0_35, %c0_36] : memref<384x128xbf16, #tpu.memory_space<vmem>>, vector<384x128xbf16>
    %cst_37 = arith.constant dense<0.000000e+00> : vector<32x128xf32>
    %110 = tpu.matmul %108, %109, %cst_37 {dimension_numbers = #tpu.dot_dimension_numbers<[1], [0], [0], [1], [0, 0, 1, 1], [], []>} : vector<32x384xbf16>, vector<384x128xbf16>, vector<32x128xf32> -> vector<32x128xf32>
    %c0_38 = arith.constant 0 : index
    %c0_39 = arith.constant 0 : index
    %111 = vector.load %arg5[%c0_38, %c0_39] : memref<1x128xf32, #tpu.memory_space<vmem>>, vector<1x128xf32>
    %c0_40 = arith.constant 0 : index
    %c0_41 = arith.constant 0 : index
    %112 = vector.load %arg6[%c0_40, %c0_41] : memref<1x128xf32, #tpu.memory_space<vmem>>, vector<1x128xf32>
    %cst_42 = arith.constant dense<0.000000e+00> : vector<128xf32>
    %113 = vector.multi_reduction <add>, %110, %cst_42 [0] : vector<32x128xf32> to vector<128xf32>
    %114 = vector.shape_cast %113 : vector<128xf32> to vector<1x128xf32>
    %115 = arith.mulf %110, %110 : vector<32x128xf32>
    %cst_43 = arith.constant dense<0.000000e+00> : vector<128xf32>
    %116 = vector.multi_reduction <add>, %115, %cst_43 [0] : vector<32x128xf32> to vector<128xf32>
    %117 = vector.shape_cast %116 : vector<128xf32> to vector<1x128xf32>
    %118 = tpu.concatenate %114, %117 in 0 : vector<1x128xf32>, vector<1x128xf32> -> vector<2x128xf32>
    %c8_i32_44 = arith.constant 8 : i32
    %119 = tpu.dynamic_rotate %118 by %c8_i32_44 dim 1 : vector<2x128xf32>, i32 -> vector<2x128xf32>
    %120 = arith.addf %118, %119 : vector<2x128xf32>
    %c16_i32_45 = arith.constant 16 : i32
    %121 = tpu.dynamic_rotate %120 by %c16_i32_45 dim 1 : vector<2x128xf32>, i32 -> vector<2x128xf32>
    %122 = arith.addf %120, %121 : vector<2x128xf32>
    %c32_i32_46 = arith.constant 32 : i32
    %123 = tpu.dynamic_rotate %122 by %c32_i32_46 dim 1 : vector<2x128xf32>, i32 -> vector<2x128xf32>
    %124 = arith.addf %122, %123 : vector<2x128xf32>
    %c64_i32_47 = arith.constant 64 : i32
    %125 = tpu.dynamic_rotate %124 by %c64_i32_47 dim 1 : vector<2x128xf32>, i32 -> vector<2x128xf32>
    %126 = arith.addf %124, %125 : vector<2x128xf32>
    %127 = vector.extract_strided_slice %126 {offsets = [0, 0], sizes = [1, 128], strides = [1, 1]} : vector<2x128xf32> to vector<1x128xf32>
    %cst_48 = arith.constant 0.001953125 : f32
    %128 = vector.broadcast %cst_48 : f32 to vector<1x128xf32>
    %129 = arith.mulf %127, %128 : vector<1x128xf32>
    %130 = vector.extract_strided_slice %126 {offsets = [1, 0], sizes = [1, 128], strides = [1, 1]} : vector<2x128xf32> to vector<1x128xf32>
    %cst_49 = arith.constant 0.001953125 : f32
    %131 = vector.broadcast %cst_49 : f32 to vector<1x128xf32>
    %132 = arith.mulf %130, %131 : vector<1x128xf32>
    %133 = arith.mulf %129, %129 : vector<1x128xf32>
    %134 = arith.subf %132, %133 : vector<1x128xf32>
    %cst_50 = arith.constant 9.99999974E-6 : f32
    %135 = vector.broadcast %cst_50 : f32 to vector<1x128xf32>
    %136 = arith.addf %134, %135 : vector<1x128xf32>
    %137 = math.rsqrt %136 : vector<1x128xf32>
    %138 = arith.mulf %137, %111 : vector<1x128xf32>
    %139 = vector.broadcast %138 : vector<1x128xf32> to vector<32x128xf32>
    %140 = arith.mulf %110, %139 : vector<32x128xf32>
    %141 = arith.mulf %129, %138 : vector<1x128xf32>
    %142 = arith.subf %112, %141 : vector<1x128xf32>
    %143 = vector.broadcast %142 : vector<1x128xf32> to vector<32x128xf32>
    %144 = arith.addf %140, %143 : vector<32x128xf32>
    %cst_51 = arith.constant 5.000000e-01 : f32
    %145 = vector.broadcast %cst_51 : f32 to vector<32x128xf32>
    %146 = arith.mulf %145, %144 : vector<32x128xf32>
    %cst_52 = arith.constant 0.707106769 : f32
    %147 = vector.broadcast %cst_52 : f32 to vector<32x128xf32>
    %148 = arith.mulf %144, %147 : vector<32x128xf32>
    %cst_53 = arith.constant 0.000000e+00 : f32
    %149 = vector.broadcast %cst_53 : f32 to vector<32x128xf32>
    %150 = arith.cmpf oge, %148, %149 : vector<32x128xf32>
    %cst_54 = arith.constant 1.000000e+00 : f32
    %cst_55 = arith.constant -1.000000e+00 : f32
    %151 = vector.broadcast %cst_54 : f32 to vector<32x128xf32>
    %152 = vector.broadcast %cst_55 : f32 to vector<32x128xf32>
    %153 = arith.select %150, %151, %152 : vector<32x128xi1>, vector<32x128xf32>
    %154 = math.absf %148 : vector<32x128xf32>
    %cst_56 = arith.constant 0.327591091 : f32
    %155 = vector.broadcast %cst_56 : f32 to vector<32x128xf32>
    %156 = arith.mulf %155, %154 : vector<32x128xf32>
    %cst_57 = arith.constant 1.000000e+00 : f32
    %157 = vector.broadcast %cst_57 : f32 to vector<32x128xf32>
    %158 = arith.addf %157, %156 : vector<32x128xf32>
    %159 = tpu.reciprocal %158 {approx = true} : vector<32x128xf32> -> vector<32x128xf32>
    %cst_58 = arith.constant 1.06140542 : f32
    %160 = vector.broadcast %cst_58 : f32 to vector<32x128xf32>
    %161 = arith.mulf %160, %159 : vector<32x128xf32>
    %cst_59 = arith.constant -1.45315206 : f32
    %162 = vector.broadcast %cst_59 : f32 to vector<32x128xf32>
    %163 = arith.addf %161, %162 : vector<32x128xf32>
    %164 = arith.mulf %163, %159 : vector<32x128xf32>
    %cst_60 = arith.constant 1.42141378 : f32
    %165 = vector.broadcast %cst_60 : f32 to vector<32x128xf32>
    %166 = arith.addf %164, %165 : vector<32x128xf32>
    %167 = arith.mulf %166, %159 : vector<32x128xf32>
    %cst_61 = arith.constant -0.284496725 : f32
    %168 = vector.broadcast %cst_61 : f32 to vector<32x128xf32>
    %169 = arith.addf %167, %168 : vector<32x128xf32>
    %170 = arith.mulf %169, %159 : vector<32x128xf32>
    %cst_62 = arith.constant 0.254829586 : f32
    %171 = vector.broadcast %cst_62 : f32 to vector<32x128xf32>
    %172 = arith.addf %170, %171 : vector<32x128xf32>
    %173 = arith.mulf %172, %159 : vector<32x128xf32>
    %cst_63 = arith.constant 0.000000e+00 : f32
    %174 = vector.broadcast %cst_63 : f32 to vector<32x128xf32>
    %175 = arith.subf %174, %154 : vector<32x128xf32>
    %176 = arith.mulf %175, %154 : vector<32x128xf32>
    %177 = math.exp %176 : vector<32x128xf32>
    %178 = arith.mulf %173, %177 : vector<32x128xf32>
    %cst_64 = arith.constant 1.000000e+00 : f32
    %179 = vector.broadcast %cst_64 : f32 to vector<32x128xf32>
    %180 = arith.subf %179, %178 : vector<32x128xf32>
    %181 = arith.mulf %153, %180 : vector<32x128xf32>
    %cst_65 = arith.constant 1.000000e+00 : f32
    %182 = vector.broadcast %cst_65 : f32 to vector<32x128xf32>
    %183 = arith.addf %182, %181 : vector<32x128xf32>
    %184 = arith.mulf %146, %183 : vector<32x128xf32>
    %185 = vector.shape_cast %184 : vector<32x128xf32> to vector<16x2x128xf32>
    %cst_66 = arith.constant dense<0xFF800000> : vector<16x128xf32>
    %186 = vector.multi_reduction <maximumf>, %185, %cst_66 [1] : vector<16x2x128xf32> to vector<16x128xf32>
    %187 = arith.truncf %186 : vector<16x128xf32> to vector<16x128xbf16>
    %c0_67 = arith.constant 0 : index
    %c0_68 = arith.constant 0 : index
    %188 = vector.load %arg7[%c0_67, %c0_68] : memref<128x128xbf16, #tpu.memory_space<vmem>>, vector<128x128xbf16>
    %cst_69 = arith.constant dense<0.000000e+00> : vector<16x128xf32>
    %189 = tpu.matmul %187, %188, %cst_69 {dimension_numbers = #tpu.dot_dimension_numbers<[1], [0], [0], [1], [0, 0, 1, 1], [], []>} : vector<16x128xbf16>, vector<128x128xbf16>, vector<16x128xf32> -> vector<16x128xf32>
    %190 = vector.extract_strided_slice %189 {offsets = [0, 0], sizes = [16, 64], strides = [1, 1]} : vector<16x128xf32> to vector<16x64xf32>
    %191 = vector.extract_strided_slice %189 {offsets = [0, 64], sizes = [16, 64], strides = [1, 1]} : vector<16x128xf32> to vector<16x64xf32>
    %192 = arith.maximumf %190, %191 : vector<16x64xf32>
    %193 = vector.extract_strided_slice %192 {offsets = [0, 0], sizes = [8, 64], strides = [1, 1]} : vector<16x64xf32> to vector<8x64xf32>
    %194 = vector.extract_strided_slice %192 {offsets = [8, 0], sizes = [8, 64], strides = [1, 1]} : vector<16x64xf32> to vector<8x64xf32>
    %195 = tpu.concatenate %193, %194 in 1 : vector<8x64xf32>, vector<8x64xf32> -> vector<8x128xf32>
    %c0_70 = arith.constant 0 : index
    %c0_71 = arith.constant 0 : index
    %196 = vector.load %arg8[%c0_70, %c0_71] : memref<8x128xf32, #tpu.memory_space<vmem>>, vector<8x128xf32>
    tpu.vector_store %arg8[%c0_70, %c0_71], %195 {strides = array<i32>} : memref<8x128xf32, #tpu.memory_space<vmem>>, vector<8x128xf32>,
    return
  }
}

</mosaic_0001>

<bundles_post_ra>
// kernel: tile.23
= control target key start
LH: loop header
LB: loop body
LE: loop exit
PB: predicated region body
PF: predicated region fallthrough
CT: control target
= control target key end

     0   :  { %s28_s0 = inlined_call_operand.vmem [shape: f32[8], index: 0, kind: input, shape index: {}]   ;;  %s29_s1 = inlined_call_operand.vmem [shape: f32[16,8], index: 1, kind: output, shape index: {}]  }
   0x1   :  { %v4_v0 = vld [vmem:[%s28_s0] ss:$0 sm:$0xff] }
   0x2   :  { %5 = vst [vmem:[%s29_s1] sm:$0xff] %v4_v0  ;;  %8 = vst [vmem:[%s29_s1 + $0x8] sm:$0xff] %v4_v0 }

// kernel: tile.24
= control target key start
LH: loop header
LB: loop body
LE: loop exit
PB: predicated region body
PF: predicated region fallthrough
CT: control target
= control target key end

     0   :  { %s133_s10 = smov 120   ;;  %s134_s11 = smov 104   ;;  %vm3_vm0 = vcmask 64512   ;;  %vm9_vm1 = vcmask 1048512   ;;  %vm15_vm2 = vcmask 982912   ;;  %vm21_vm3 = vcmask 917312   ;;  %s209_s0 = inlined_call_operand.vmem [shape: f32[16,8], index: 0, kind: input, shape index: {}]   ;;  %s210_s1 = inlined_call_operand.vmem [shape: f32[1,128], index: 1, kind: output, shape index: {}]  }
   0x1   :  { %v103_v0 = vld [vmem:[%s209_s0 + $0xf] sm:$0x1]   ;;  %v105_v1 = vld [vmem:[%s209_s0 + $0xd] sm:$0x1]   ;;  %v104_v2 = vld [vmem:[%s209_s0 + $0xe] sm:$0x1]  }
   0x2   :  { %7 = vrot.lane.b32.xlu0 %v103_v0, %s133_s10  ;;  %19 = vrot.lane.b32.xlu1 %v105_v1, %s134_s11  ;;  %v106_v3 = vld [vmem:[%s209_s0 + $0xc] sm:$0x1]   ;;  %s135_s16 = smov 112   ;;  %s136_s17 = smov 96   ;;  %v107_v4 = vld [vmem:[%s209_s0 + $0xb] sm:$0x1]  }
   0x3   :  { %v108_v5 = vld [vmem:[%s209_s0 + $0xa] sm:$0x1]   ;;  %v2_v6 = vld [vmem:[%s209_s0] sm:$0x1]   ;;  %s137_s24 = smov 88   ;;  %s138_s25 = smov 80  }
   0x4   :  { %4 = vst.msk [vmem:[#allocation0] sm:$0x1] %vm3_vm0, %v2_v6   ;;  %v109_v7 = vld [vmem:[%s209_s0 + $0x9] sm:$0x1]   ;;  %v110_v8 = vld [vmem:[%s209_s0 + $0x8] sm:$0x1]  }
   0x5   :  { %s139_s30 = smov 72   ;;  %s140_s2 = smov 64   ;;  %v111_v9 = vld [vmem:[%s209_s0 + $0x7] sm:$0x1]   ;;  %v112_v10 = vld [vmem:[%s209_s0 + $0x6] sm:$0x1]  }
   0x6   :  { %13 = vrot.lane.b32.xlu0 %v104_v2, %s135_s16  ;;  %25 = vrot.lane.b32.xlu1 %v106_v3, %s136_s17  ;;  %s141_s7 = smov 56   ;;  %s142_s8 = smov 48   ;;  %v113_v11 = vld [vmem:[%s209_s0 + $0x5] sm:$0x1]   ;;  %v114_v12 = vld [vmem:[%s209_s0 + $0x4] sm:$0x1]  }
   0x7   :  { %s143_s13 = smov 40   ;;  %s144_s14 = smov 32   ;;  %v115_v13 = vld [vmem:[%s209_s0 + $0x3] sm:$0x1]   ;;  %v116_v14 = vld [vmem:[%s209_s0 + $0x2] sm:$0x1]  }
   0x8   :  { %s145_s19 = smov 24   ;;  %s146_s20 = smov 16   ;;  %v117_v15 = vld [vmem:[%s209_s0 + $0x1] sm:$0x1]   ;;  %vm27_vm4 = vcmask 851712   ;;  %vm33_vm5 = vcmask 786112  }
   0x9   :  { %s147_s0 = smov 8   ;;  %vm39_vm6 = vcmask 720512   ;;  %vm45_vm7 = vcmask 654912   ;;  %vm51_vm8 = vcmask 589312   ;;  %vm57_vm9 = vcmask 523712  }
   0xa   :  { %31 = vrot.lane.b32.xlu0 %v107_v4, %s137_s24  ;;  %37 = vrot.lane.b32.xlu1 %v108_v5, %s138_s25  ;;  %vm63_vm10 = vcmask 458112   ;;  %vm69_vm11 = vcmask 392512   ;;  %vm75_vm12 = vcmask 326912   ;;  %vm81_vm13 = vcmask 261312  }
   0xb   :  { %vm87_vm14 = vcmask 195712   ;;  %vm93_vm15 = vcmask 130112  }
   0xe   :  { %43 = vrot.lane.b32.xlu0 %v109_v7, %s139_s30  ;;  %49 = vrot.lane.b32.xlu1 %v110_v8, %s140_s2 }
  0x12   :  { %55 = vrot.lane.b32.xlu0 %v111_v9, %s141_s7  ;;  %61 = vrot.lane.b32.xlu1 %v112_v10, %s142_s8 }
  0x16   :  { %67 = vrot.lane.b32.xlu0 %v113_v11, %s143_s13  ;;  %73 = vrot.lane.b32.xlu1 %v114_v12, %s144_s14 }
  0x1a   :  { %79 = vrot.lane.b32.xlu0 %v115_v13, %s145_s19  ;;  %85 = vrot.lane.b32.xlu1 %v116_v14, %s146_s20 }
  0x1e   :  { %91 = vrot.lane.b32.xlu0 %v117_v15, %s147_s0 }
  0x74   :  { %v8_v16 = vpop.permute.xlu0 %7   ;;  %v20_v17 = vpop.permute.xlu1 %19  }
  0x75   :  { %10 = vst.msk [vmem:[#allocation0] sm:$0x1] %vm9_vm1, %v8_v16  }
  0x78   :  { %v14_v18 = vpop.permute.xlu0 %13   ;;  %v26_v19 = vpop.permute.xlu1 %25  }
  0x79   :  { %16 = vst.msk [vmem:[#allocation0] sm:$0x1] %vm15_vm2, %v14_v18  }
  0x7a   :  { %22 = vst.msk [vmem:[#allocation0] sm:$0x1] %vm21_vm3, %v20_v17  }
  0x7b   :  { %28 = vst.msk [vmem:[#allocation0] sm:$0x1] %vm27_vm4, %v26_v19  }
  0x7c   :  { %v32_v20 = vpop.permute.xlu0 %31   ;;  %v38_v21 = vpop.permute.xlu1 %37  }
  0x7d   :  { %34 = vst.msk [vmem:[#allocation0] sm:$0x1] %vm33_vm5, %v32_v20  }
  0x7e   :  { %40 = vst.msk [vmem:[#allocation0] sm:$0x1] %vm39_vm6, %v38_v21  }
  0x80   :  { %v44_v22 = vpop.permute.xlu0 %43   ;;  %v50_v23 = vpop.permute.xlu1 %49  }
  0x81   :  { %46 = vst.msk [vmem:[#allocation0] sm:$0x1] %vm45_vm7, %v44_v22  }
  0x82   :  { %52 = vst.msk [vmem:[#allocation0] sm:$0x1] %vm51_vm8, %v50_v23  }
  0x84   :  { %v56_v24 = vpop.permute.xlu0 %55   ;;  %v62_v25 = vpop.permute.xlu1 %61  }
  0x85   :  { %58 = vst.msk [vmem:[#allocation0] sm:$0x1] %vm57_vm9, %v56_v24  }
  0x86   :  { %64 = vst.msk [vmem:[#allocation0] sm:$0x1] %vm63_vm10, %v62_v25  }
  0x88   :  { %v68_v26 = vpop.permute.xlu0 %67   ;;  %v74_v27 = vpop.permute.xlu1 %73  }
  0x89   :  { %70 = vst.msk [vmem:[#allocation0] sm:$0x1] %vm69_vm11, %v68_v26  }
  0x8a   :  { %76 = vst.msk [vmem:[#allocation0] sm:$0x1] %vm75_vm12, %v74_v27  }
  0x8c   :  { %v80_v28 = vpop.permute.xlu0 %79   ;;  %v86_v29 = vpop.permute.xlu1 %85  }
  0x8d   :  { %82 = vst.msk [vmem:[#allocation0] sm:$0x1] %vm81_vm13, %v80_v28  }
  0x8e   :  { %88 = vst.msk [vmem:[#allocation0] sm:$0x1] %vm87_vm14, %v86_v29  }
  0x90   :  { %v92_v30 = vpop.permute.xlu0 %91  }
  0x91   :  { %94 = vst.msk [vmem:[#allocation0] sm:$0x1] %vm93_vm15, %v92_v30  }
  0x98   :  { %v99_v31 = vld [vmem:[#allocation0] sm:$0x1] }
  0x99   :  { %102 = vst [vmem:[%s210_s1] sm:$0x1] %v99_v31 }

// kernel: downsample_forward.1
= control target key start
LH: loop header
LB: loop body
LE: loop exit
PB: predicated region body
PF: predicated region fallthrough
CT: control target
= control target key end

     0   :  { %v1633_v0 = vmov 0   ;;  %vm150_vm0 = vcmask 523264   ;;  %vm230_vm1 = vcmask 1040384   ;;  %s1636_s15 = smov 32   ;;  %s1637_s16 = smov 64   ;;  %vm1639_vm8 = vmmov 0   ;;  %s2121_s1 = inlined_call_operand.vmem [shape: bf16[192,128], index: 1, kind: input, shape index: {}]   ;;  %s2122_s0 = inlined_call_operand.vmem [shape: bf16[32,192], index: 0, kind: input, shape index: {}]   ;;  %s2123_s4 = inlined_call_operand.vmem [shape: bf16[384,128], index: 4, kind: input, shape index: {}]   ;;  %s2124_s2 = inlined_call_operand.vmem [shape: f32[1,128], index: 2, kind: input, shape index: {}]   ;;  %s2125_s3 = inlined_call_operand.vmem [shape: f32[1,128], index: 3, kind: input, shape index: {}]   ;;  %s2126_s7 = inlined_call_operand.vmem [shape: bf16[128,128], index: 7, kind: input, shape index: {}]   ;;  %s2127_s5 = inlined_call_operand.vmem [shape: f32[1,128], index: 5, kind: input, shape index: {}]   ;;  %s2128_s6 = inlined_call_operand.vmem [shape: f32[1,128], index: 6, kind: input, shape index: {}]   ;;  %s2129_s8 = inlined_call_operand.vmem [shape: f32[8,128], index: 8, kind: output, shape index: {}]  }
   0x1   :  { %157 = vmatprep.subr.bf16.mxu0 %v1633_v0  ;;  %v1547_v1 = vld [vmem:[%s2121_s1 + $0x38] sm:$0xff]   ;;  %v1548_v2 = vld [vmem:[%s2121_s1 + $0x30] sm:$0xff]   ;;  %v1549_v3 = vld [vmem:[%s2121_s1 + $0x28] sm:$0xff]   ;;  %vm388_vm10 = vsmask.f32 256 }
   0x2   :  { %158 = vmatpush1.bf16.msra.mxu0 %v1547_v1  ;;  %v1550_v4 = vld [vmem:[%s2121_s1 + $0x20] sm:$0xff]   ;;  %v1551_v6 = vld [vmem:[%s2121_s1 + $0x18] sm:$0xff]   ;;  %v1552_v7 = vld [vmem:[%s2121_s1 + $0x10] sm:$0xff]  }
   0x3   :  { %159 = vmatprep.subr.bf16.mxu0 %v1633_v0  ;;  %v1561_v5 = vld [vmem:[%s2122_s0 + $0x4] ss:$8 sps:$4 sm:$0xff]   ;;  %v1555_v10 = vld [vmem:[%s2121_s1 + $0x58] sm:$0xff]   ;;  %v1556_v11 = vld [vmem:[%s2121_s1 + $0x50] sm:$0xff]  }
   0x4   :  { %1399 = vmatprep.mubr.msk.bf16.mxu0 %vm150_vm0, %v1561_v5  ;;  %v1553_v8 = vld [vmem:[%s2121_s1 + $0x8] sm:$0xff]   ;;  %v1554_v9 = vld [vmem:[%s2121_s1] sm:$0xff]   ;;  %v1562_v15 = vld [vmem:[%s2122_s0 + $0x14] ss:$8 sps:$4 sm:$0xff]  }
   0x5   :  { %v1557_v12 = vld [vmem:[%s2121_s1 + $0x48] sm:$0xff]   ;;  %v1558_v13 = vld [vmem:[%s2121_s1 + $0x40] sm:$0xff]   ;;  %v1564_v16 = vld [vmem:[%s2122_s0 + $0x10] ss:$8 sps:$4 sm:$0xff]   ;;  %s1635_s1 = smov 16  }
   0x6   :  { %160 = vmatpush1.bf16.msra.mxu0 %v1548_v2  ;;  %v1559_v14 = vld [vmem:[%s2122_s0] ss:$8 sps:$4 sm:$0xff]   ;;  %s1634_s0 = smov 8   ;;  %v1565_v54 = vld [vmem:[%s2123_s4 + $0x78] sm:$0xff]   ;;  %v1567_v56 = vld [vmem:[%s2123_s4 + $0x70] sm:$0xff]  }
   0x7   :  { %161 = vmatprep.subr.bf16.mxu0 %v1633_v0  ;;  %v1566_v55 = vld [vmem:[%s2123_s4 + $0x38] sm:$0xff]   ;;  %1451 = vmatprep.subr.bf16.mxu1 %v1565_v54  ;;  %v1568_v57 = vld [vmem:[%s2123_s4 + $0x30] sm:$0xff]   ;;  %v1569_v58 = vld [vmem:[%s2123_s4 + $0x68] sm:$0xff]  }
   0x8   :  { %1452 = vmatpush3.bf16.msra.mxu1 %v1566_v55  ;;  %v1570_v59 = vld [vmem:[%s2123_s4 + $0x28] sm:$0xff]   ;;  %v1571_v60 = vld [vmem:[%s2123_s4 + $0x60] sm:$0xff]   ;;  %v1573_v62 = vld [vmem:[%s2123_s4 + $0x58] sm:$0xff]  }
   0x9   :  { %1453 = vmatprep.subr.bf16.mxu1 %v1567_v56  ;;  %v1572_v61 = vld [vmem:[%s2123_s4 + $0x20] sm:$0xff]   ;;  %v1574_v63 = vld [vmem:[%s2123_s4 + $0x18] sm:$0xff]   ;;  %v1575_v1 = vld [vmem:[%s2123_s4 + $0x50] sm:$0xff]  }
   0xa   :  { %162 = vmatpush1.bf16.msra.mxu0 %v1549_v3  ;;  %v1576_v2 = vld [vmem:[%s2123_s4 + $0x10] sm:$0xff]   ;;  %v1577_v3 = vld [vmem:[%s2123_s4 + $0x48] sm:$0xff]   ;;  %v1579_v5 = vld [vmem:[%s2123_s4 + $0x40] sm:$0xff]  }
   0xb   :  { %163 = vmatprep.subr.bf16.mxu0 %v1633_v0  ;;  %vm478_vm9 = vmpackc.low %vm1639_vm8, %vm1639_vm8 }
   0xc   :  { %1454 = vmatpush3.bf16.msra.mxu1 %v1568_v57  ;;  %vm1905_vm13 = vmand %vm230_vm1, %vm388_vm10 }
   0xd   :  { %1455 = vmatprep.subr.bf16.mxu1 %v1569_v58 }
   0xe   :  { %164 = vmatpush1.bf16.msra.mxu0 %v1550_v4  ;;  %v1578_v4 = vld [vmem:[%s2123_s4 + $0x8] sm:$0xff]  }
   0xf   :  { %165 = vmatprep.subr.bf16.mxu0 %v1633_v0 }
  0x10   :  { %1456 = vmatpush3.bf16.msra.mxu1 %v1570_v59 }
  0x11   :  { %1457 = vmatprep.subr.bf16.mxu1 %v1571_v60 }
  0x12   :  { %166 = vmatpush1.bf16.msra.mxu0 %v1551_v6  ;;  %v1580_v6 = vld [vmem:[%s2123_s4] sm:$0xff]  }
  0x13   :  { %167 = vmatprep.subr.bf16.mxu0 %v1633_v0 }
  0x14   :  { %1458 = vmatpush3.bf16.msra.mxu1 %v1572_v61 }
  0x15   :  { %1459 = vmatprep.subr.bf16.mxu1 %v1573_v62 }
  0x16   :  { %168 = vmatpush1.bf16.msra.mxu0 %v1552_v7  ;;  %v1825_v7 = vld [vmem:[%s2123_s4 + $0xb8] sm:$0xff]  }
  0x17   :  { %169 = vmatprep.subr.bf16.mxu0 %v1633_v0 }
  0x18   :  { %1460 = vmatpush3.bf16.msra.mxu1 %v1574_v63 }
  0x19   :  { %1461 = vmatprep.subr.bf16.mxu1 %v1575_v1 }
  0x1a   :  { %170 = vmatpush1.bf16.msra.mxu0 %v1553_v8 }
  0x1b   :  { %171 = vmatprep.subr.bf16.mxu0 %v1633_v0 }
  0x1c   :  { %1462 = vmatpush3.bf16.msra.mxu1 %v1576_v2 }
  0x1d   :  { %1463 = vmatprep.subr.bf16.mxu1 %v1577_v3 }
  0x1e   :  { %172 = vmatpush1.bf16.msra.mxu0 %v1554_v9 }
  0x1f   :  { %181 = vmatprep.subr.bf16.mxu0 %v1633_v0 }
  0x20   :  { %1464 = vmatpush3.bf16.msra.mxu1 %v1578_v4 }
  0x21   :  { %1465 = vmatprep.subr.bf16.mxu1 %v1579_v5 }
  0x22   :  { %182 = vmatpush2.bf16.msra.mxu0 %v1555_v10 }
  0x23   :  { %183 = vmatprep.subr.bf16.mxu0 %v1633_v0 }
  0x24   :  { %1466 = vmatpush3.bf16.msra.mxu1 %v1580_v6 }
  0x25   :  { %1498 = vmatprep.subr.bf16.mxu1 %v1825_v7 }
  0x26   :  { %184 = vmatpush2.bf16.msra.mxu0 %v1556_v11 }
  0x27   :  { %185 = vmatprep.subr.bf16.mxu0 %v1633_v0 }
  0x2a   :  { %186 = vmatpush2.bf16.msra.mxu0 %v1557_v12 }
  0x2b   :  { %187 = vmatprep.subr.bf16.mxu0 %v1633_v0 }
  0x2e   :  { %188 = vmatpush2.bf16.msra.mxu0 %v1558_v13 }
  0x31   :  { %190 = vmatmul.mubr.bf16.vlgmr.msra.gmra.mxu0 %v1559_v14 }
  0x32   :  { %1400 = vmatprep.mubr.msk.bf16.mxu0 %vm150_vm0, %v1562_v15  ;;  %v259_v15 = vlaneseq }
  0x39   :  { %198 = vmatmul.mubr.bf16.gmra.mxu0 %v1564_v16  ;;  %v1828_v16 = vshrl.u32 %v259_v15, 7 }
  0xf1   :  { %v1749_v17 = vpop.f32.mrf.mxu0 }
  0xf2   :  { %v217_v23 = vmul.f32 %v1749_v17, %v1749_v17 }
  0xf3   :  { %v193_v18 = vpop.f32.mrf.mxu0 }
  0xf4   :  { %v1401_v18 = vld [vmem:[%s2124_s2] ss:$0 sm:$0xff] }
  0xf5   :  { %v1751_v19 = vpop.f32.mrf.mxu0 }
  0xf6   :  { %v218_v21 = vmul.f32 %v1751_v19, %v1751_v19  ;;  %v208_v24 = vadd.f32 %v1751_v19, %v1749_v17 }
  0xf7   :  { %v196_v20 = vpop.f32.mrf.mxu0 }
  0xf8   :  { %v221_v27 = vadd.f32 %v218_v21, %v217_v23  ;;  %v261_v21 = vsub.s32 1, %v1828_v16 }
  0xf9   :  { %v1755_v22 = vpop.f32.mrf.mxu0 }
  0xfa   :  { %v219_v25 = vmul.f32 %v1755_v22, %v1755_v22  ;;  %v209_v28 = vadd.f32 %v208_v24, %v1755_v22 }
  0xfb   :  { %v201_v26 = vpop.f32.mrf.mxu0 }
  0xfc   :  { %v222_v30 = vadd.f32 %v221_v27, %v219_v25  ;;  %v207_v25 = vld [vmem:[%s2125_s3] sm:$0x1]  ;;  %v275_v27 = vsub.s32 0, %v1828_v16 }
  0xfd   :  { %v1764_v29 = vpop.f32.mrf.mxu0 }
  0xfe   :  { %v210_v31 = vadd.f32 %v209_v28, %v1764_v29  ;;  %v220_v32 = vmul.f32 %v1764_v29, %v1764_v29 }
  0xff   :  { %v204_v33 = vpop.f32.mrf.mxu0 }
 0x100   :  { %v211_v34 = vrot.slane %v210_v31, 4  ;;  %v223_v35 = vadd.f32 %v222_v30, %v220_v32 }
 0x102   :  { %v212_v36 = vadd.f32 %v211_v34, %v210_v31  ;;  %v224_v37 = vrot.slane %v223_v35, 4 }
 0x104   :  { %v213_v38 = vrot.slane %v212_v36, 2  ;;  %v225_v39 = vadd.f32 %v224_v37, %v223_v35 }
 0x106   :  { %v214_v40 = vadd.f32 %v213_v38, %v212_v36  ;;  %v226_v41 = vrot.slane %v225_v39, 2 }
 0x108   :  { %v215_v42 = vrot.slane %v214_v40, 1  ;;  %v227_v43 = vadd.f32 %v226_v41, %v225_v39 }
 0x10a   :  { %v228_v44 = vrot.slane %v227_v43, 1  ;;  %v216_v45 = vadd.f32 %v215_v42, %v214_v40 }
 0x10c   :  { %v229_v46 = vadd.f32 %v228_v44, %v227_v43 }
 0x10e   :  { %v231_v47 = vsel %vm230_vm1, %v216_v45, %v229_v46 }
 0x10f   :  { %232 = vrot.lane.b32.xlu0 %v231_v47, %s1634_s0 }
 0x181   :  { %v233_v48 = vpop.permute.xlu0 %232 }
 0x182   :  { %v234_v49 = vadd.f32 %v233_v48, %v231_v47 }
 0x184   :  { %235 = vrot.lane.b32.xlu0 %v234_v49, %s1635_s1 }
 0x1f6   :  { %v236_v50 = vpop.permute.xlu0 %235 }
 0x1f7   :  { %v237_v51 = vadd.f32 %v236_v50, %v234_v49 }
 0x1f9   :  { %238 = vrot.lane.b32.xlu1 %v237_v51, %s1636_s15 }
 0x26b   :  { %v239_v52 = vpop.permute.xlu1 %238 }
 0x26c   :  { %v240_v53 = vadd.f32 %v239_v52, %v237_v51 }
 0x26e   :  { %241 = vrot.lane.b32.xlu1 %v240_v53, %s1637_s16 }
 0x2e0   :  { %v242_v8 = vpop.permute.xlu1 %241 }
 0x2e1   :  { %v243_v9 = vadd.f32 %v242_v8, %v240_v53 }
 0x2e3   :  { %v244_v10 = vmul.f32 0.001953125, %v243_v9 }
 0x2e5   :  { %v245_v11 = vmul.f32 %v244_v10, %v244_v10 }
 0x2e7   :  { %v247_v12 = vrot.slane %v245_v11, 7 }
 0x2e9   :  { %v249_v13 = vsub.f32 %v244_v10, %v247_v12 }
 0x2eb   :  { %v250_v14 = vadd.f32 1e-05, %v249_v13 }
 0x2ed   :  { %1597 = vrsqrt.f32 %v250_v14 }
 0x2fa   :  { %v1598_v20 = vpop.eup %1597 }
 0x2fb   :  { %v258_v23 = vmul.f32 %v1598_v20, %v1401_v18 }
 0x2fd   :  { %v268_v24 = vrot.slane %v258_v23, 1  ;;  %v262_v26 = vrot.slane %v258_v23, %v261_v21 }
 0x2ff   :  { %v270_v28 = vmul.f32 %v268_v24, %v244_v10  ;;  %v263_v31 = vmul.f32 %v262_v26, %v1749_v17  ;;  %v264_v33 = vmul.f32 %v262_v26, %v1751_v19  ;;  %v265_v34 = vmul.f32 %v262_v26, %v1755_v22 }
 0x300   :  { %v266_v35 = vmul.f32 %v262_v26, %v1764_v29 }
 0x301   :  { %v271_v30 = vsub.f32 %v207_v25, %v270_v28 }
 0x303   :  { %v276_v32 = vrot.slane %v271_v30, %v275_v27 }
 0x305   :  { %v1846_v36 = vadd.f32 %v276_v32, %v263_v31  ;;  %v1848_v37 = vadd.f32 %v276_v32, %v264_v33  ;;  %v1850_v38 = vadd.f32 %v276_v32, %v265_v34  ;;  %v1852_v39 = vadd.f32 %v276_v32, %v266_v35 }
 0x307   :  { %v1855_v40 = vmul.f32 0.70710677, %v1846_v36  ;;  %v1858_v17 = vmul.f32 0.70710677, %v1848_v37  ;;  %v1861_v19 = vmul.f32 0.70710677, %v1850_v38 }
 0x308   :  { %v1864_v22 = vmul.f32 0.70710677, %v1852_v39 }
 0x309   :  { %v298_v29 = vand.u32 2147483647, %v1855_v40  ;;  %v299_v41 = vand.u32 2147483647, %v1858_v17  ;;  %v300_v44 = vand.u32 2147483647, %v1861_v19 }
 0x30a   :  { %v301_v45 = vand.u32 2147483647, %v1864_v22  ;;  %vm290_vm2 = vcmp.ge.f32.partialorder %v1855_v40, 0.0  ;;  %vm291_vm3 = vcmp.ge.f32.partialorder %v1858_v17, 0.0  ;;  %v423_v40 = vadd.s32 16, %v1828_v16 }
 0x30b   :  { %v302_v42 = vmul.f32 0.3275911, %v298_v29  ;;  %v303_v43 = vmul.f32 0.3275911, %v299_v41  ;;  %v304_v48 = vmul.f32 0.3275911, %v300_v44 }
 0x30c   :  { %v305_v49 = vmul.f32 0.3275911, %v301_v45  ;;  %v350_v52 = vsub.f32 0.0, %v298_v29  ;;  %v351_v53 = vsub.f32 0.0, %v299_v41  ;;  %v352_v55 = vsub.f32 0.0, %v300_v44 }
 0x30d   :  { %v306_v46 = vadd.f32 1.0, %v302_v42  ;;  %v307_v47 = vadd.f32 1.0, %v303_v43  ;;  %v308_v50 = vadd.f32 1.0, %v304_v48  ;;  %v353_v57 = vsub.f32 0.0, %v301_v45 }
 0x30e   :  { %v309_v51 = vadd.f32 1.0, %v305_v49  ;;  %v354_v54 = vmul.f32 %v350_v52, %v298_v29  ;;  %v355_v56 = vmul.f32 %v351_v53, %v299_v41  ;;  %v356_v62 = vmul.f32 %v352_v55, %v300_v44 }
 0x30f   :  { %1599 = vrcp.f32 %v306_v46  ;;  %v357_v2 = vmul.f32 %v353_v57, %v301_v45  ;;  %v429_v46 = vand.u32 15, %v1828_v16  ;;  %vm292_vm5 = vcmp.ge.f32.partialorder %v1861_v19, 0.0 }
 0x310   :  { %1601 = vrcp.f32 %v307_v47  ;;  %v358_v61 = vmul.f32 1.442695, %v354_v54  ;;  %v360_v1 = vmul.f32 1.442695, %v355_v56  ;;  %v362_v10 = vmul.f32 1.442695, %v356_v62 }
 0x311   :  { %1603 = vrcp.f32 %v308_v50  ;;  %v364_v13 = vmul.f32 1.442695, %v357_v2  ;;  %vm1873_vm4 = vcmp.eq.s32.totalorder %v429_v46, 0  ;;  %vm293_vm6 = vcmp.ge.f32.partialorder %v1864_v22, 0.0 }
 0x312   :  { %1605 = vrcp.f32 %v309_v51  ;;  %vm477_vm7 = vmpackc.low %vm1873_vm4, %vm1873_vm4  ;;  %vm409_vm4 = vsmask.f32 7424 }
 0x313   :  { %1607 = vpow2.f32 %v358_v61  ;;  %v1638_v61 = vmov -1.0  }
 0x314   :  { %1609 = vpow2.f32 %v360_v1  ;;  %v295_v2 = vsel %vm291_vm3, 1.0, %v1638_v61  ;;  %v296_v19 = vsel %vm292_vm5, 1.0, %v1638_v61 }
 0x315   :  { %1611 = vpow2.f32 %v362_v10 }
 0x316   :  { %1613 = vpow2.f32 %v364_v13 }
 0x31c   :  { %v1600_v58 = vpop.eup %1599 }
 0x31d   :  { %v1602_v59 = vpop.eup %1601  ;;  %v314_v60 = vmul.f32 1.0614054, %v1600_v58 }
 0x31e   :  { %v315_v63 = vmul.f32 1.0614054, %v1602_v59  ;;  %v1604_v4 = vpop.eup %1603 }
 0x31f   :  { %v318_v3 = vadd.f32 -1.4531521, %v314_v60  ;;  %v1606_v6 = vpop.eup %1605  ;;  %v316_v9 = vmul.f32 1.0614054, %v1604_v4 }
 0x320   :  { %v319_v5 = vadd.f32 -1.4531521, %v315_v63  ;;  %v317_v12 = vmul.f32 1.0614054, %v1606_v6  ;;  %v1608_v48 = vpop.eup %1607 }
 0x321   :  { %v322_v8 = vmul.f32 %v1600_v58, %v318_v3  ;;  %v320_v15 = vadd.f32 -1.4531521, %v316_v9  ;;  %v1610_v51 = vpop.eup %1609  ;;  %v282_v9 = vmul.f32 0.5, %v1846_v36 }
 0x322   :  { %v323_v11 = vmul.f32 %v1602_v59, %v319_v5  ;;  %v321_v20 = vadd.f32 -1.4531521, %v317_v12  ;;  %v1612_v60 = vpop.eup %1611 }
 0x323   :  { %v326_v14 = vadd.f32 1.4214138, %v322_v8  ;;  %v324_v24 = vmul.f32 %v1604_v4, %v320_v15  ;;  %v1614_v1 = vpop.eup %1613  ;;  %v443_v15 = vand.u32 15, %v423_v40  ;;  %v1586_v40 = vld [vmem:[%s2123_s4 + $0x90] sm:$0xff]  }
 0x324   :  { %v327_v18 = vadd.f32 1.4214138, %v323_v11  ;;  %v325_v26 = vmul.f32 %v1606_v6, %v321_v20  ;;  %v283_v11 = vmul.f32 0.5, %v1848_v37  ;;  %v1894_v37 = vsel %vm478_vm9, 65537, %v1633_v0 }
 0x325   :  { %v330_v23 = vmul.f32 %v1600_v58, %v326_v14  ;;  %v328_v30 = vadd.f32 1.4214138, %v324_v24  ;;  %v297_v14 = vsel %vm293_vm6, 1.0, %v1638_v61  ;;  %v481_v24 = vsel %vm477_vm7, 65537, %v1633_v0 }
 0x326   :  { %v331_v25 = vmul.f32 %v1602_v59, %v327_v18  ;;  %v329_v32 = vadd.f32 1.4214138, %v325_v26  ;;  %vm1898_vm11 = vcmp.eq.s32.totalorder %v443_v15, 0  ;;  %vm417_vm9 = vcmask 1047552  }
 0x327   :  { %v334_v28 = vadd.f32 -0.28449672, %v330_v23  ;;  %v332_v34 = vmul.f32 %v1604_v4, %v328_v30  ;;  %v285_v30 = vmul.f32 0.5, %v1852_v39  ;;  %vm479_vm14 = vmpackc.low %vm1898_vm11, %vm1898_vm11 }
 0x328   :  { %v335_v31 = vadd.f32 -0.28449672, %v331_v25  ;;  %v333_v29 = vmul.f32 %v1606_v6, %v329_v32  ;;  %v284_v25 = vmul.f32 0.5, %v1850_v38  ;;  %v483_v46 = vsel %vm479_vm14, 65537, %v1633_v0 }
 0x329   :  { %v338_v33 = vmul.f32 %v1600_v58, %v334_v28  ;;  %v336_v42 = vadd.f32 -0.28449672, %v332_v34  ;;  %vm1074_vm14 = vcmask 1041408  }
 0x32a   :  { %v339_v35 = vmul.f32 %v1602_v59, %v335_v31  ;;  %v337_v44 = vadd.f32 -0.28449672, %v333_v29 }
 0x32b   :  { %v342_v41 = vadd.f32 0.2548296, %v338_v33  ;;  %v340_v47 = vmul.f32 %v1604_v4, %v336_v42 }
 0x32c   :  { %v343_v43 = vadd.f32 0.2548296, %v339_v35  ;;  %v341_v50 = vmul.f32 %v1606_v6, %v337_v44  ;;  %v1402_v35 = vcombine.low %v481_v24, %v1894_v37 }
 0x32d   :  { %v346_v45 = vmul.f32 %v1600_v58, %v342_v41  ;;  %v344_v53 = vadd.f32 0.2548296, %v340_v47 }
 0x32e   :  { %v347_v49 = vmul.f32 %v1602_v59, %v343_v43  ;;  %v345_v55 = vadd.f32 0.2548296, %v341_v50  ;;  %v294_v59 = vsel %vm290_vm2, 1.0, %v1638_v61  ;;  %vm1447_vm2 = vcmp.eq.s16.totalorder %v1402_v35, 0 }
 0x32f   :  { %v366_v52 = vmul.f32 %v1608_v48, %v346_v45  ;;  %v348_v58 = vmul.f32 %v1604_v4, %v344_v53  ;;  %v422_v4 = vadd.s32 8, %v1828_v16  ;;  %v1582_v45 = vld [vmem:[%s2123_s4 + $0xb0] sm:$0xff]   ;;  %v1583_v53 = vld [vmem:[%s2123_s4 + $0xa8] sm:$0xff]  }
 0x330   :  { %v367_v54 = vmul.f32 %v1610_v51, %v347_v49  ;;  %v349_v63 = vmul.f32 %v1606_v6, %v345_v55 }
 0x331   :  { %v370_v56 = vsub.f32 1.0, %v366_v52  ;;  %v368_v3 = vmul.f32 %v1612_v60, %v348_v58  ;;  %v436_v23 = vand.u32 15, %v422_v4  ;;  %v1403_v52 = vcombine.low %v483_v46, %v1894_v37 }
 0x332   :  { %v371_v62 = vsub.f32 1.0, %v367_v54  ;;  %v369_v8 = vmul.f32 %v1614_v1, %v349_v63  ;;  %v1587_v1 = vld [vmem:[%s2123_s4 + $0x88] sm:$0xff]  }
 0x333   :  { %v374_v17 = vmul.f32 %v370_v56, %v294_v59  ;;  %v372_v6 = vsub.f32 1.0, %v368_v3  ;;  %vm496_vm12 = vcmp.eq.s32.totalorder %v436_v23, 15  ;;  %vm1448_vm3 = vcmp.eq.s16.totalorder %v1403_v52, 0 }
 0x334   :  { %v375_v5 = vmul.f32 %v371_v62, %v295_v2  ;;  %v373_v22 = vsub.f32 1.0, %v369_v8  ;;  %vm500_vm15 = vmpackc.low %vm496_vm12, %vm496_vm12  ;;  %v424_v59 = vadd.s32 24, %v1828_v16  ;;  %v1585_v62 = vld [vmem:[%s2123_s4 + $0x98] sm:$0xff]   ;;  %v1588_v2 = vld [vmem:[%s2123_s4 + $0x80] sm:$0xff]  }
 0x335   :  { %v378_v10 = vadd.f32 1.0, %v374_v17  ;;  %v376_v36 = vmul.f32 %v372_v6, %v296_v19  ;;  %v504_v49 = vsel %vm500_vm15, 65537, %v1633_v0  ;;  %vm1251_vm15 = vcmask 1041409  }
 0x336   :  { %v379_v12 = vadd.f32 1.0, %v375_v5  ;;  %v377_v20 = vmul.f32 %v373_v22, %v297_v14  ;;  %v1404_v54 = vcombine.low %v1894_v37, %v504_v49  ;;  %v450_v63 = vand.u32 15, %v424_v59 }
 0x337   :  { %v382_v13 = vmul.f32 %v378_v10, %v282_v9  ;;  %v380_v26 = vadd.f32 1.0, %v376_v36  ;;  %v1640_v59 = vmov 0.0  }
 0x338   :  { %v383_v18 = vmul.f32 %v379_v12, %v283_v11  ;;  %v381_v31 = vadd.f32 1.0, %v377_v20  ;;  %vm1449_vm5 = vcmp.eq.s16.totalorder %v1404_v54, 0  ;;  %vm498_vm6 = vcmp.eq.s32.totalorder %v450_v63, 15  ;;  %1518 = vmatprep.subr.bf16.mxu0 %v1640_v59  ;;  %1534 = vmatprep.mubr.msk.bf16.mxu0 %vm1639_vm8, %v1640_v59  ;;  %v1591_v63 = vld [vmem:[%s2126_s7 + $0x28] sm:$0xff]  }
 0x339   :  { %v384_v32 = vmul.f32 %v380_v26, %v284_v25  ;;  %vm502_vm7 = vmpackc.low %vm498_vm6, %vm498_vm6  ;;  %vm1261_vm6 = vcmask 1046534  }
 0x33a   :  { %v386_v28 = vpack.c.bf16 %v383_v18, %v382_v13  ;;  %v385_v29 = vmul.f32 %v381_v31, %v285_v30  ;;  %v506_v17 = vsel %vm502_vm7, 65537, %v1633_v0  ;;  %vm1263_vm7 = vcmask 1047559  }
 0x33b   :  { %v1405_v3 = vcombine.low %v1894_v37, %v506_v17  ;;  %v1595_v17 = vld [vmem:[%s2126_s7 + $0x8] sm:$0xff]  }
 0x33c   :  { %v390_v34 = vshrl.u32 %v386_v28, 16  ;;  %741 = vmatprep.mubr.bf16.mxu1 %v386_v28  ;;  %v393_v39 = vshll.u32 %v386_v28, 16  ;;  %v387_v42 = vpack.c.bf16 %v385_v29, %v384_v32 }
 0x33d   :  { %vm1450_vm11 = vcmp.eq.s16.totalorder %v1405_v3, 0 }
 0x33e   :  { %v392_v41 = vrot.slane %v390_v34, 7  ;;  %v397_v44 = vshrl.u32 %v387_v42, 16  ;;  %v410_v50 = vrot.slane %v393_v39, 1  ;;  %v400_v51 = vshll.u32 %v387_v42, 16 }
 0x340   :  { %v395_v43 = vor.u32 %v393_v39, %v392_v41  ;;  %v399_v48 = vrot.slane %v397_v44, 7  ;;  %v411_v56 = vor.u32 %v410_v50, %v390_v34  ;;  %v412_v57 = vrot.slane %v400_v51, 1 }
 0x342   :  { %v408_v47 = vsel %vm1905_vm13, 0, %v395_v43  ;;  %v402_v55 = vor.u32 %v400_v51, %v399_v48  ;;  %v413_v60 = vsel %vm409_vm4, %v411_v56, %v412_v57  ;;  %v414_v5 = vor.u32 %v412_v57, %v397_v44 }
 0x343   :  { %1431 = vmatmul.mubr.msk.bf16.vlgmr.msra.gmra.mxu1 %vm1447_vm2, %v408_v47  ;;  %vm1253_vm2 = vcmask 1042434  }
 0x344   :  { %1499 = vmatpush3.bf16.msra.mxu1 %v1825_v7  ;;  %749 = vmatprep.mubr.bf16.mxu1 %v387_v42  ;;  %v1584_v7 = vld [vmem:[%s2123_s4 + $0xa0] sm:$0xff]   ;;  %v403_v58 = vsel %vm388_vm10, %v392_v41, %v402_v55  ;;  %vm418_vm10 = vmand %vm417_vm9, %vm409_vm4  ;;  %vm1257_vm4 = vcmask 1044484  }
 0x345   :  { %1500 = vmatprep.subr.bf16.mxu1 %v1582_v45  ;;  %v419_v8 = vsel %vm418_vm10, %v414_v5, 0  ;;  %v1596_v5 = vld [vmem:[%s2126_s7] sm:$0xff]  }
 0x348   :  { %1501 = vmatpush3.bf16.msra.mxu1 %v1582_v45 }
 0x349   :  { %1502 = vmatprep.subr.bf16.mxu1 %v1583_v53 }
 0x34b   :  { %1433 = vmatmul.mubr.msk.bf16.gmra.mxu1 %vm1448_vm3, %v403_v58  ;;  %vm1255_vm3 = vcmask 1043459  }
 0x34c   :  { %1503 = vmatpush3.bf16.msra.mxu1 %v1583_v53  ;;  %1514 = vmatprep.mubr.msk.bf16.mxu1 %vm1449_vm5, %v413_v60  ;;  %v1589_v60 = vld [vmem:[%s2126_s7 + $0x38] sm:$0xff]   ;;  %vm1259_vm5 = vcmask 1045509  }
 0x34d   :  { %1504 = vmatprep.subr.bf16.mxu1 %v1584_v7  ;;  %1519 = vmatpush3.bf16.msra.mxu0 %v1589_v60 }
 0x34e   :  { %1520 = vmatprep.subr.bf16.mxu0 %v1640_v59 }
 0x350   :  { %1505 = vmatpush3.bf16.msra.mxu1 %v1584_v7 }
 0x351   :  { %1506 = vmatprep.subr.bf16.mxu1 %v1585_v62 }
 0x354   :  { %1507 = vmatpush3.bf16.msra.mxu1 %v1585_v62  ;;  %v1590_v62 = vld [vmem:[%s2126_s7 + $0x30] sm:$0xff]  }
 0x355   :  { %1508 = vmatprep.subr.bf16.mxu1 %v1586_v40  ;;  %1521 = vmatpush3.bf16.msra.mxu0 %v1590_v62 }
 0x356   :  { %1522 = vmatprep.subr.bf16.mxu0 %v1640_v59 }
 0x358   :  { %1509 = vmatpush3.bf16.msra.mxu1 %v1586_v40  ;;  %v1592_v40 = vld [vmem:[%s2126_s7 + $0x20] sm:$0xff]  }
 0x359   :  { %1510 = vmatprep.subr.bf16.mxu1 %v1587_v1  ;;  %1523 = vmatpush3.bf16.msra.mxu0 %v1591_v63 }
 0x35a   :  { %1524 = vmatprep.subr.bf16.mxu0 %v1640_v59 }
 0x35c   :  { %1511 = vmatpush3.bf16.msra.mxu1 %v1587_v1  ;;  %v1593_v1 = vld [vmem:[%s2126_s7 + $0x18] sm:$0xff]  }
 0x35d   :  { %1512 = vmatprep.subr.bf16.mxu1 %v1588_v2  ;;  %1525 = vmatpush3.bf16.msra.mxu0 %v1592_v40 }
 0x35e   :  { %1526 = vmatprep.subr.bf16.mxu0 %v1640_v59 }
 0x360   :  { %1513 = vmatpush3.bf16.msra.mxu1 %v1588_v2  ;;  %v1594_v2 = vld [vmem:[%s2126_s7 + $0x10] sm:$0xff]  }
 0x361   :  { %1527 = vmatpush3.bf16.msra.mxu0 %v1593_v1 }
 0x362   :  { %1528 = vmatprep.subr.bf16.mxu0 %v1640_v59 }
 0x363   :  { %1515 = vmatmul.mubr.msk.bf16.vlgmr.msra.gmra.mxu1 %vm1450_vm11, %v419_v8 }
 0x365   :  { %1529 = vmatpush3.bf16.msra.mxu0 %v1594_v2 }
 0x366   :  { %1530 = vmatprep.subr.bf16.mxu0 %v1640_v59 }
 0x369   :  { %1531 = vmatpush3.bf16.msra.mxu0 %v1595_v17 }
 0x36a   :  { %1532 = vmatprep.subr.bf16.mxu0 %v1640_v59 }
 0x36d   :  { %1533 = vmatpush3.bf16.msra.mxu0 %v1596_v5 }
 0x403   :  { %v1467_v4 = vpop.f32.mrf.mxu1 }
 0x405   :  { %v1468_v9 = vpop.f32.mrf.mxu1 }
 0x406   :  { %v1469_v14 = vadd.f32 %v1468_v9, %v1467_v4 }
 0x407   :  { %v1470_v10 = vpop.f32.mrf.mxu1 }
 0x409   :  { %v1471_v6 = vpop.f32.mrf.mxu1 }
 0x40a   :  { %v1472_v15 = vadd.f32 %v1471_v6, %v1470_v10 }
 0x40b   :  { %v1473_v11 = vpop.f32.mrf.mxu1 }
 0x40d   :  { %v1474_v12 = vpop.f32.mrf.mxu1 }
 0x40e   :  { %v1475_v18 = vadd.f32 %v1474_v12, %v1473_v11  ;;  %v1438_v12 = vld [vmem:[%s2127_s5] ss:$0 sm:$0xff] }
 0x40f   :  { %v1476_v19 = vpop.f32.mrf.mxu1 }
 0x411   :  { %v1477_v0 = vpop.f32.mrf.mxu1 }
 0x412   :  { %v1478_v24 = vadd.f32 %v1477_v0, %v1476_v19 }
 0x423   :  { %v1516_v22 = vpop.f32.mrf.mxu1 }
 0x424   :  { %v1948_v37 = vadd.f32 %v1516_v22, %v1475_v18 }
 0x425   :  { %v792_v13 = vpop.f32.mrf.mxu1 }
 0x426   :  { %v1946_v20 = vadd.f32 %v1469_v14, %v792_v13  ;;  %v820_v32 = vmul.f32 %v1948_v37, %v1948_v37  ;;  %v808_v13 = vld [vmem:[%s2128_s6] sm:$0x1] }
 0x427   :  { %v1517_v36 = vpop.f32.mrf.mxu1 }
 0x428   :  { %v818_v26 = vmul.f32 %v1946_v20, %v1946_v20  ;;  %v1954_v28 = vadd.f32 %v1517_v36, %v1478_v24 }
 0x429   :  { %v795_v23 = vpop.f32.mrf.mxu1 }
 0x42a   :  { %v1950_v25 = vadd.f32 %v1472_v15, %v795_v23  ;;  %v821_v35 = vmul.f32 %v1954_v28, %v1954_v28 }
 0x42c   :  { %v809_v30 = vadd.f32 %v1950_v25, %v1946_v20  ;;  %v819_v31 = vmul.f32 %v1950_v25, %v1950_v25 }
 0x42e   :  { %v810_v33 = vadd.f32 %v809_v30, %v1948_v37  ;;  %v822_v34 = vadd.f32 %v819_v31, %v818_v26 }
 0x430   :  { %v811_v29 = vadd.f32 %v810_v33, %v1954_v28  ;;  %v823_v38 = vadd.f32 %v822_v34, %v820_v32 }
 0x432   :  { %v812_v41 = vrot.slane %v811_v29, 4  ;;  %v824_v39 = vadd.f32 %v823_v38, %v821_v35 }
 0x434   :  { %v813_v42 = vadd.f32 %v812_v41, %v811_v29  ;;  %v825_v43 = vrot.slane %v824_v39, 4 }
 0x436   :  { %v814_v44 = vrot.slane %v813_v42, 2  ;;  %v826_v45 = vadd.f32 %v825_v43, %v824_v39 }
 0x438   :  { %v815_v46 = vadd.f32 %v814_v44, %v813_v42  ;;  %v827_v47 = vrot.slane %v826_v45, 2 }
 0x43a   :  { %v816_v48 = vrot.slane %v815_v46, 1  ;;  %v828_v49 = vadd.f32 %v827_v47, %v826_v45 }
 0x43c   :  { %v829_v50 = vrot.slane %v828_v49, 1  ;;  %v817_v51 = vadd.f32 %v816_v48, %v815_v46 }
 0x43e   :  { %v830_v52 = vadd.f32 %v829_v50, %v828_v49 }
 0x440   :  { %v831_v53 = vsel %vm230_vm1, %v817_v51, %v830_v52 }
 0x441   :  { %832 = vrot.lane.b32.xlu0 %v831_v53, %s1634_s0 }
 0x4b3   :  { %v833_v54 = vpop.permute.xlu0 %832 }
 0x4b4   :  { %v834_v55 = vadd.f32 %v833_v54, %v831_v53 }
 0x4b6   :  { %835 = vrot.lane.b32.xlu1 %v834_v55, %s1635_s1 }
 0x528   :  { %v836_v56 = vpop.permute.xlu1 %835 }
 0x529   :  { %v837_v57 = vadd.f32 %v836_v56, %v834_v55 }
 0x52b   :  { %838 = vrot.lane.b32.xlu0 %v837_v57, %s1636_s15 }
 0x59d   :  { %v839_v7 = vpop.permute.xlu0 %838 }
 0x59e   :  { %v840_v58 = vadd.f32 %v839_v7, %v837_v57 }
 0x5a0   :  { %841 = vrot.lane.b32.xlu1 %v840_v58, %s1637_s16 }
 0x612   :  { %v842_v3 = vpop.permute.xlu1 %841 }
 0x613   :  { %v843_v8 = vadd.f32 %v842_v3, %v840_v58 }
 0x615   :  { %v844_v4 = vmul.f32 0.001953125, %v843_v8 }
 0x617   :  { %v845_v9 = vmul.f32 %v844_v4, %v844_v4 }
 0x619   :  { %v847_v10 = vrot.slane %v845_v9, 7 }
 0x61b   :  { %v849_v6 = vsub.f32 %v844_v4, %v847_v10 }
 0x61d   :  { %v850_v11 = vadd.f32 1e-05, %v849_v6 }
 0x61f   :  { %1615 = vrsqrt.f32 %v850_v11 }
 0x62c   :  { %v1616_v19 = vpop.eup %1615 }
 0x62d   :  { %v858_v0 = vmul.f32 %v1616_v19, %v1438_v12 }
 0x62f   :  { %v868_v22 = vrot.slane %v858_v0, 1  ;;  %v862_v14 = vrot.slane %v858_v0, %v261_v21 }
 0x631   :  { %v870_v36 = vmul.f32 %v868_v22, %v844_v4  ;;  %v863_v18 = vmul.f32 %v862_v14, %v1946_v20  ;;  %v864_v23 = vmul.f32 %v862_v14, %v1950_v25  ;;  %v865_v24 = vmul.f32 %v862_v14, %v1948_v37 }
 0x632   :  { %v866_v26 = vmul.f32 %v862_v14, %v1954_v28 }
 0x633   :  { %v871_v15 = vsub.f32 %v808_v13, %v870_v36 }
 0x635   :  { %v876_v30 = vrot.slane %v871_v15, %v275_v27 }
 0x637   :  { %v2010_v31 = vadd.f32 %v876_v30, %v863_v18  ;;  %v2012_v32 = vadd.f32 %v876_v30, %v864_v23  ;;  %v2014_v33 = vadd.f32 %v876_v30, %v865_v24  ;;  %v2016_v21 = vadd.f32 %v876_v30, %v866_v26 }
 0x639   :  { %v2019_v34 = vmul.f32 0.70710677, %v2010_v31  ;;  %v2022_v20 = vmul.f32 0.70710677, %v2012_v32  ;;  %v2025_v37 = vmul.f32 0.70710677, %v2014_v33 }
 0x63a   :  { %v2028_v25 = vmul.f32 0.70710677, %v2016_v21 }
 0x63b   :  { %v898_v27 = vand.u32 2147483647, %v2019_v34  ;;  %v899_v28 = vand.u32 2147483647, %v2022_v20  ;;  %v900_v35 = vand.u32 2147483647, %v2025_v37 }
 0x63c   :  { %v901_v29 = vand.u32 2147483647, %v2028_v25  ;;  %vm890_vm1 = vcmp.ge.f32.partialorder %v2019_v34, 0.0  ;;  %vm891_vm8 = vcmp.ge.f32.partialorder %v2022_v20, 0.0  ;;  %vm892_vm12 = vcmp.ge.f32.partialorder %v2025_v37, 0.0 }
 0x63d   :  { %v902_v38 = vmul.f32 0.3275911, %v898_v27  ;;  %v903_v41 = vmul.f32 0.3275911, %v899_v28  ;;  %v904_v39 = vmul.f32 0.3275911, %v900_v35 }
 0x63e   :  { %v905_v42 = vmul.f32 0.3275911, %v901_v29  ;;  %v950_v47 = vsub.f32 0.0, %v898_v27  ;;  %v951_v48 = vsub.f32 0.0, %v899_v28  ;;  %v952_v49 = vsub.f32 0.0, %v900_v35 }
 0x63f   :  { %v906_v43 = vadd.f32 1.0, %v902_v38  ;;  %v907_v44 = vadd.f32 1.0, %v903_v41  ;;  %v908_v45 = vadd.f32 1.0, %v904_v39  ;;  %v953_v50 = vsub.f32 0.0, %v901_v29 }
 0x640   :  { %v909_v46 = vadd.f32 1.0, %v905_v42  ;;  %v954_v51 = vmul.f32 %v950_v47, %v898_v27  ;;  %v955_v52 = vmul.f32 %v951_v48, %v899_v28  ;;  %v956_v53 = vmul.f32 %v952_v49, %v900_v35 }
 0x641   :  { %1617 = vrcp.f32 %v906_v43  ;;  %v957_v55 = vmul.f32 %v953_v50, %v901_v29  ;;  %v1641_v35 = vmov 1983009808   ;;  %vm893_vm13 = vcmp.ge.f32.partialorder %v2028_v25, 0.0 }
 0x642   :  { %1619 = vrcp.f32 %v907_v44  ;;  %v958_v7 = vmul.f32 1.442695, %v954_v51  ;;  %v960_v59 = vmul.f32 1.442695, %v955_v52  ;;  %v962_v1 = vmul.f32 1.442695, %v956_v53 }
 0x643   :  { %1621 = vrcp.f32 %v908_v45  ;;  %v964_v3 = vmul.f32 1.442695, %v957_v55  ;;  %v992_v29 = vunpack.c.l.s4 %v1641_v35  ;;  %v895_v34 = vsel %vm891_vm8, 1.0, %v1638_v61 }
 0x644   :  { %1623 = vrcp.f32 %v909_v46  ;;  %v896_v20 = vsel %vm892_vm12, 1.0, %v1638_v61  ;;  %v882_v37 = vmul.f32 0.5, %v2010_v31  ;;  %v885_v31 = vmul.f32 0.5, %v2016_v21 }
 0x645   :  { %1625 = vpow2.f32 %v958_v7  ;;  %v993_v50 = vunpack.c.0.s8 %v992_v29 }
 0x646   :  { %1627 = vpow2.f32 %v960_v59 }
 0x647   :  { %1629 = vpow2.f32 %v962_v1  ;;  %v2041_v59 = vsub.s32 %v993_v50, %v1828_v16 }
 0x648   :  { %1631 = vpow2.f32 %v964_v3 }
 0x64e   :  { %v1618_v54 = vpop.eup %1617 }
 0x64f   :  { %v1620_v56 = vpop.eup %1619  ;;  %v914_v57 = vmul.f32 1.0614054, %v1618_v54 }
 0x650   :  { %v1622_v58 = vpop.eup %1621  ;;  %v915_v60 = vmul.f32 1.0614054, %v1620_v56 }
 0x651   :  { %v1624_v62 = vpop.eup %1623  ;;  %v916_v63 = vmul.f32 1.0614054, %v1622_v58  ;;  %v918_v40 = vadd.f32 -1.4531521, %v914_v57 }
 0x652   :  { %v917_v2 = vmul.f32 1.0614054, %v1624_v62  ;;  %v919_v17 = vadd.f32 -1.4531521, %v915_v60  ;;  %v1626_v43 = vpop.eup %1625 }
 0x653   :  { %v920_v5 = vadd.f32 -1.4531521, %v916_v63  ;;  %v922_v8 = vmul.f32 %v1618_v54, %v918_v40  ;;  %v1628_v46 = vpop.eup %1627  ;;  %v897_v40 = vsel %vm893_vm13, 1.0, %v1638_v61 }
 0x654   :  { %v921_v4 = vadd.f32 -1.4531521, %v917_v2  ;;  %v923_v9 = vmul.f32 %v1620_v56, %v919_v17  ;;  %v1630_v49 = vpop.eup %1629  ;;  %v883_v2 = vmul.f32 0.5, %v2012_v32 }
 0x655   :  { %v924_v10 = vmul.f32 %v1622_v58, %v920_v5  ;;  %v926_v6 = vadd.f32 1.4214138, %v922_v8  ;;  %v1632_v53 = vpop.eup %1631  ;;  %v884_v5 = vmul.f32 0.5, %v2014_v33 }
 0x656   :  { %v925_v11 = vmul.f32 %v1624_v62, %v921_v4  ;;  %v927_v12 = vadd.f32 1.4214138, %v923_v9 }
 0x657   :  { %v928_v19 = vadd.f32 1.4214138, %v924_v10  ;;  %v930_v0 = vmul.f32 %v1618_v54, %v926_v6 }
 0x658   :  { %v929_v22 = vadd.f32 1.4214138, %v925_v11  ;;  %v931_v13 = vmul.f32 %v1620_v56, %v927_v12 }
 0x659   :  { %v932_v14 = vmul.f32 %v1622_v58, %v928_v19  ;;  %v934_v36 = vadd.f32 -0.28449672, %v930_v0 }
 0x65a   :  { %v933_v15 = vmul.f32 %v1624_v62, %v929_v22  ;;  %v935_v18 = vadd.f32 -0.28449672, %v931_v13 }
 0x65b   :  { %v936_v23 = vadd.f32 -0.28449672, %v932_v14  ;;  %v938_v24 = vmul.f32 %v1618_v54, %v934_v36 }
 0x65c   :  { %v937_v26 = vadd.f32 -0.28449672, %v933_v15  ;;  %v939_v30 = vmul.f32 %v1620_v56, %v935_v18 }
 0x65d   :  { %v940_v27 = vmul.f32 %v1622_v58, %v936_v23  ;;  %v942_v28 = vadd.f32 0.2548296, %v938_v24 }
 0x65e   :  { %v941_v38 = vmul.f32 %v1624_v62, %v937_v26  ;;  %v943_v41 = vadd.f32 0.2548296, %v939_v30 }
 0x65f   :  { %v944_v39 = vadd.f32 0.2548296, %v940_v27  ;;  %v946_v42 = vmul.f32 %v1618_v54, %v942_v28  ;;  %v894_v54 = vsel %vm890_vm1, 1.0, %v1638_v61 }
 0x660   :  { %v945_v44 = vadd.f32 0.2548296, %v941_v38  ;;  %v947_v45 = vmul.f32 %v1620_v56, %v943_v41 }
 0x661   :  { %v948_v47 = vmul.f32 %v1622_v58, %v944_v39  ;;  %v966_v48 = vmul.f32 %v1626_v43, %v946_v42 }
 0x662   :  { %v949_v51 = vmul.f32 %v1624_v62, %v945_v44  ;;  %v967_v52 = vmul.f32 %v1628_v46, %v947_v45 }
 0x663   :  { %v968_v55 = vmul.f32 %v1630_v49, %v948_v47  ;;  %v970_v57 = vsub.f32 1.0, %v966_v48 }
 0x664   :  { %v969_v56 = vmul.f32 %v1632_v53, %v949_v51  ;;  %v971_v7 = vsub.f32 1.0, %v967_v52 }
 0x665   :  { %v972_v58 = vsub.f32 1.0, %v968_v55  ;;  %v974_v60 = vmul.f32 %v970_v57, %v894_v54 }
 0x666   :  { %v973_v62 = vsub.f32 1.0, %v969_v56  ;;  %v975_v63 = vmul.f32 %v971_v7, %v895_v34 }
 0x667   :  { %v976_v25 = vmul.f32 %v972_v58, %v896_v20  ;;  %v978_v1 = vadd.f32 1.0, %v974_v60 }
 0x668   :  { %v977_v17 = vmul.f32 %v973_v62, %v897_v40  ;;  %v979_v3 = vadd.f32 1.0, %v975_v63 }
 0x669   :  { %v980_v8 = vadd.f32 1.0, %v976_v25  ;;  %v982_v4 = vmul.f32 %v978_v1, %v882_v37 }
 0x66a   :  { %v981_v16 = vadd.f32 1.0, %v977_v17  ;;  %v983_v9 = vmul.f32 %v979_v3, %v883_v2 }
 0x66b   :  { %v984_v10 = vmul.f32 %v980_v8, %v884_v5  ;;  %v990_v6 = vcombine.high %v982_v4, %v982_v4  ;;  %v997_v11 = vrot.slane %v982_v4, %v2041_v59 }
 0x66c   :  { %v1007_v61 = vcombine.high %v983_v9, %v983_v9  ;;  %v1014_v12 = vrot.slane %v983_v9, %v2041_v59  ;;  %v985_v22 = vmul.f32 %v981_v16, %v885_v31 }
 0x66d   :  { %v1004_v32 = vrot.slane %v990_v6, %v2041_v59  ;;  %v1005_v19 = vcombine.high %v997_v11, %v997_v11  ;;  %v1024_v0 = vcombine.high %v984_v10, %v984_v10  ;;  %v1031_v33 = vrot.slane %v984_v10, %v2041_v59 }
 0x66e   :  { %v2054_v14 = vrot.slane %v1007_v61, %v2041_v59  ;;  %v1075_v36 = vsel %vm1074_vm14, %v997_v11, -inf  ;;  %v1022_v15 = vcombine.high %v1014_v12, %v1014_v12  ;;  %v1041_v28 = vcombine.high %v985_v22, %v985_v22 }
 0x66f   :  { %v1006_v13 = vcombine.high %v1004_v32, %v1004_v32  ;;  %v1038_v18 = vrot.slane %v1024_v0, %v2041_v59  ;;  %v1076_v21 = vrot.slane %v1075_v36, 4  ;;  %v1082_v23 = vsel %vm1074_vm14, %v1005_v19, -inf }
 0x670   :  { %v1039_v24 = vcombine.high %v1031_v33, %v1031_v33  ;;  %v1083_v26 = vrot.slane %v1082_v23, 4  ;;  %v1089_v30 = vsel %vm1074_vm14, %v1004_v32, -inf  ;;  %v1103_v38 = vsel %vm1074_vm14, %v1014_v12, -inf }
 0x671   :  { %v1096_v27 = vsel %vm1074_vm14, %v1006_v13, -inf  ;;  %v1077_v35 = vmax.f32 %v1075_v36, %v1076_v21  ;;  %v1090_v29 = vrot.slane %v1089_v30, 4  ;;  %v1048_v41 = vrot.slane %v985_v22, %v2041_v59 }
 0x672   :  { %v1084_v39 = vmax.f32 %v1082_v23, %v1083_v26  ;;  %v1097_v42 = vrot.slane %v1096_v27, 4  ;;  %v1131_v43 = vsel %vm1074_vm14, %v1031_v33, -inf  ;;  %v1040_v44 = vcombine.high %v1038_v18, %v1038_v18 }
 0x673   :  { %v1078_v45 = vrot.slane %v1077_v35, 2  ;;  %v1091_v46 = vmax.f32 %v1089_v30, %v1090_v29  ;;  %v1104_v47 = vrot.slane %v1103_v38, 4  ;;  %v1110_v49 = vsel %vm1074_vm14, %v1022_v15, -inf }
 0x674   :  { %v1085_v48 = vrot.slane %v1084_v39, 2  ;;  %v1132_v50 = vrot.slane %v1131_v43, 4  ;;  %v1138_v51 = vsel %vm1074_vm14, %v1039_v24, -inf  ;;  %v1145_v57 = vsel %vm1074_vm14, %v1038_v18, -inf }
 0x675   :  { %v1079_v52 = vmax.f32 %v1077_v35, %v1078_v45  ;;  %v1092_v53 = vrot.slane %v1091_v46, 2  ;;  %v1139_v55 = vrot.slane %v1138_v51, 4  ;;  %v1056_v54 = vcombine.high %v1048_v41, %v1048_v41 }
 0x676   :  { %v1098_v56 = vmax.f32 %v1096_v27, %v1097_v42  ;;  %v1133_v7 = vmax.f32 %v1131_v43, %v1132_v50  ;;  %v1146_v34 = vrot.slane %v1145_v57, 4  ;;  %v1105_v60 = vmax.f32 %v1103_v38, %v1104_v47 }
 0x677   :  { %v1080_v58 = vrot.slane %v1079_v52, 1  ;;  %v1140_v20 = vmax.f32 %v1138_v51, %v1139_v55  ;;  %v1152_v62 = vsel %vm1074_vm14, %v1040_v44, -inf  ;;  %v1086_v63 = vmax.f32 %v1084_v39, %v1085_v48 }
 0x678   :  { %v1111_v37 = vrot.slane %v1110_v49, 4  ;;  %v1134_v40 = vrot.slane %v1133_v7, 2  ;;  %v1147_v25 = vmax.f32 %v1145_v57, %v1146_v34  ;;  %v1093_v1 = vmax.f32 %v1091_v46, %v1092_v53 }
 0x679   :  { %v1141_v2 = vrot.slane %v1140_v20, 2  ;;  %v1153_v17 = vrot.slane %v1152_v62, 4  ;;  %v1159_v3 = vsel %vm1074_vm14, %v1048_v41, -inf  ;;  %v2069_v5 = vmax.f32 %v1079_v52, %v1080_v58 }
 0x67a   :  { %v1135_v8 = vmax.f32 %v1133_v7, %v1134_v40  ;;  %v1160_v4 = vrot.slane %v1159_v3, 4  ;;  %v1166_v16 = vsel %vm1074_vm14, %v1056_v54, -inf  ;;  %v1055_v9 = vrot.slane %v1041_v28, %v2041_v59 }
 0x67b   :  { %v1106_v10 = vrot.slane %v1105_v60, 2  ;;  %v1023_v6 = vcombine.high %v2054_v14, %v2054_v14  ;;  %v1087_v11 = vrot.slane %v1086_v63, 1  ;;  %v1148_v61 = vrot.slane %v1147_v25, 2 }
 0x67c   :  { %v1136_v31 = vrot.slane %v1135_v8, 1  ;;  %v1161_v12 = vmax.f32 %v1159_v3, %v1160_v4  ;;  %v1142_v32 = vmax.f32 %v1140_v20, %v1141_v2  ;;  %v1154_v19 = vmax.f32 %v1152_v62, %v1153_v17 }
 0x67d   :  { %v1167_v0 = vrot.slane %v1166_v16, 4  ;;  %v1099_v33 = vrot.slane %v1098_v56, 2  ;;  %v1187_v13 = vpack.c.bf16 %v2069_v5, %v2069_v5  ;;  %v1094_v36 = vrot.slane %v1093_v1, 1 }
 0x67e   :  { %v2075_v22 = vmax.f32 %v1135_v8, %v1136_v31  ;;  %v1112_v15 = vmax.f32 %v1110_v49, %v1111_v37  ;;  %v1162_v59 = vrot.slane %v1161_v12, 2  ;;  %v1107_v18 = vmax.f32 %v1105_v60, %v1106_v10 }
 0x67f   :  { %v1117_v21 = vsel %vm1074_vm14, %v2054_v14, -inf  ;;  %v1124_v23 = vsel %vm1074_vm14, %v1023_v6, -inf  ;;  %v1149_v24 = vmax.f32 %v1147_v25, %v1148_v61  ;;  %v1100_v26 = vmax.f32 %v1098_v56, %v1099_v33 }
 0x680   :  { %v1113_v30 = vrot.slane %v1112_v15, 2  ;;  %v1118_v27 = vrot.slane %v1117_v21, 4  ;;  %v1143_v28 = vrot.slane %v1142_v32, 1  ;;  %v1057_v35 = vcombine.high %v1055_v9, %v1055_v9 }
 0x681   :  { %v2082_v29 = vmax.f32 %v1086_v63, %v1087_v11  ;;  %v1125_v38 = vrot.slane %v1124_v23, 4  ;;  %v2084_v41 = vmax.f32 %v1093_v1, %v1094_v36  ;;  %v1155_v43 = vrot.slane %v1154_v19, 2 }
 0x682   :  { %v1114_v39 = vmax.f32 %v1112_v15, %v1113_v30  ;;  %v1119_v42 = vmax.f32 %v1117_v21, %v1118_v27  ;;  %v1195_v44 = vpack.c.bf16 %v2075_v22, %v2075_v22  ;;  %v1108_v14 = vrot.slane %v1107_v18, 1 }
 0x683   :  { %v1126_v45 = vmax.f32 %v1124_v23, %v1125_v38  ;;  %v1163_v46 = vmax.f32 %v1161_v12, %v1162_v59  ;;  %v1101_v47 = vrot.slane %v1100_v26, 1  ;;  %v1156_v49 = vmax.f32 %v1154_v19, %v1155_v43 }
 0x684   :  { %v1120_v48 = vrot.slane %v1119_v42, 2  ;;  %v1168_v50 = vmax.f32 %v1166_v16, %v1167_v0  ;;  %v1150_v52 = vrot.slane %v1149_v24, 1  ;;  %v1173_v53 = vsel %vm1074_vm14, %v1055_v9, -inf }
 0x685   :  { %v1127_v51 = vrot.slane %v1126_v45, 2  ;;  %v1180_v55 = vsel %vm1074_vm14, %v1057_v35, -inf  ;;  %v1115_v57 = vrot.slane %v1114_v39, 1  ;;  %v1157_v56 = vrot.slane %v1156_v49, 1 }
 0x686   :  { %v1121_v54 = vmax.f32 %v1119_v42, %v1120_v48  ;;  %v1169_v7 = vrot.slane %v1168_v50, 2  ;;  %v1164_v58 = vrot.slane %v1163_v46, 1  ;;  %v1174_v60 = vrot.slane %v1173_v53, 4 }
 0x687   :  { %v1128_v34 = vmax.f32 %v1126_v45, %v1127_v51  ;;  %v1181_v20 = vrot.slane %v1180_v55, 4  ;;  %v1102_v62 = vmax.f32 %v1100_v26, %v1101_v47  ;;  %v1144_v37 = vmax.f32 %v1142_v32, %v1143_v28 }
 0x688   :  { %v1122_v63 = vrot.slane %v1121_v54, 1  ;;  %v1170_v40 = vmax.f32 %v1168_v50, %v1169_v7  ;;  %v1109_v25 = vmax.f32 %v1107_v18, %v1108_v14  ;;  %v1151_v1 = vmax.f32 %v1149_v24, %v1150_v52 }
 0x689   :  { %v1175_v2 = vmax.f32 %v1173_v53, %v1174_v60  ;;  %v1182_v17 = vmax.f32 %v1180_v55, %v1181_v20  ;;  %v1116_v3 = vmax.f32 %v1114_v39, %v1115_v57  ;;  %v1129_v8 = vrot.slane %v1128_v34, 1 }
 0x68a   :  { %v1158_v4 = vmax.f32 %v1156_v49, %v1157_v56  ;;  %v1171_v16 = vrot.slane %v1170_v40, 1  ;;  %v1165_v9 = vmax.f32 %v1163_v46, %v1164_v58  ;;  %v1188_v11 = vpack.c.bf16 %v2082_v29, %v2082_v29 }
 0x68b   :  { %v1176_v10 = vrot.slane %v1175_v2, 2  ;;  %v1183_v6 = vrot.slane %v1182_v17, 2  ;;  %v1123_v31 = vmax.f32 %v1121_v54, %v1122_v63  ;;  %v1189_v12 = vpack.c.bf16 %v2084_v41, %v2084_v41 }
 0x68c   :  { %v1172_v61 = vmax.f32 %v1170_v40, %v1171_v16  ;;  %v1190_v32 = vpack.c.bf16 %v1102_v62, %v1102_v62  ;;  %v1191_v33 = vpack.c.bf16 %v1109_v25, %v1109_v25  ;;  %v1196_v36 = vpack.c.bf16 %v1144_v37, %v1144_v37 }
 0x68d   :  { %v1177_v19 = vmax.f32 %v1175_v2, %v1176_v10  ;;  %v1184_v0 = vmax.f32 %v1182_v17, %v1183_v6  ;;  %v1130_v15 = vmax.f32 %v1128_v34, %v1129_v8  ;;  %v1192_v59 = vpack.c.bf16 %v1116_v3, %v1116_v3 }
 0x68e   :  { %v1197_v18 = vpack.c.bf16 %v1151_v1, %v1151_v1  ;;  %v1198_v21 = vpack.c.bf16 %v1158_v4, %v1158_v4  ;;  %v1199_v26 = vpack.c.bf16 %v1165_v9, %v1165_v9  ;;  %v1236_v30 = vunpack.c.l.b16 %v1188_v11 }
 0x68f   :  { %v1178_v23 = vrot.slane %v1177_v19, 1  ;;  %v1185_v24 = vrot.slane %v1184_v0, 1  ;;  %v1200_v27 = vpack.c.bf16 %v1172_v61, %v1172_v61  ;;  %v1235_v28 = vunpack.c.l.b16 %v1187_v13 }
 0x690   :  { %v1237_v35 = vunpack.c.l.b16 %v1189_v12  ;;  %v1238_v29 = vunpack.c.l.b16 %v1190_v32  ;;  %v1243_v39 = vunpack.c.l.b16 %v1195_v44  ;;  %v1244_v42 = vunpack.c.l.b16 %v1196_v36 }
 0x691   :  { %v1179_v38 = vmax.f32 %v1177_v19, %v1178_v23  ;;  %v1186_v41 = vmax.f32 %v1184_v0, %v1185_v24  ;;  %v1193_v43 = vpack.c.bf16 %v1123_v31, %v1123_v31  ;;  %v1194_v14 = vpack.c.bf16 %v1130_v15, %v1130_v15 }
 0x692   :  { %v1245_v45 = vunpack.c.l.b16 %v1197_v18  ;;  %v1246_v46 = vunpack.c.l.b16 %v1198_v21  ;;  %v1252_v49 = vsel %vm1251_vm15, %v1236_v30, %v1235_v28  ;;  %v1265_v5 = vsel %vm1251_vm15, %v1244_v42, %v1243_v39 }
 0x693   :  { %v1201_v47 = vpack.c.bf16 %v1179_v38, %v1179_v38  ;;  %v1202_v48 = vpack.c.bf16 %v1186_v41, %v1186_v41  ;;  %v1239_v13 = vunpack.c.l.b16 %v1191_v33  ;;  %v1247_v50 = vunpack.c.l.b16 %v1199_v26 }
 0x694   :  { %v1254_v51 = vsel %vm1253_vm2, %v1237_v35, %v1252_v49  ;;  %v1266_v52 = vsel %vm1253_vm2, %v1245_v45, %v1265_v5  ;;  %v1240_v53 = vunpack.c.l.b16 %v1192_v59  ;;  %v1248_v22 = vunpack.c.l.b16 %v1200_v27 }
 0x695   :  { %v1256_v44 = vsel %vm1255_vm3, %v1238_v29, %v1254_v51  ;;  %v1267_v55 = vsel %vm1255_vm3, %v1246_v46, %v1266_v52  ;;  %v1241_v57 = vunpack.c.l.b16 %v1193_v43  ;;  %v1249_v54 = vunpack.c.l.b16 %v1201_v47 }
 0x696   :  { %v1258_v56 = vsel %vm1257_vm4, %v1239_v13, %v1256_v44  ;;  %v1268_v7 = vsel %vm1257_vm4, %v1247_v50, %v1267_v55  ;;  %v1242_v34 = vunpack.c.l.b16 %v1194_v14  ;;  %v1250_v58 = vunpack.c.l.b16 %v1202_v48 }
 0x697   :  { %v1260_v60 = vsel %vm1259_vm5, %v1240_v53, %v1258_v56  ;;  %v1269_v20 = vsel %vm1259_vm5, %v1248_v22, %v1268_v7 }
 0x698   :  { %v1262_v62 = vsel %vm1261_vm6, %v1241_v57, %v1260_v60  ;;  %v1270_v63 = vsel %vm1261_vm6, %v1249_v54, %v1269_v20 }
 0x699   :  { %v1264_v37 = vsel %vm1263_vm7, %v1242_v34, %v1262_v62  ;;  %v1271_v40 = vsel %vm1263_vm7, %v1250_v58, %v1270_v63 }
 0x69a   :  { %v1272_v25 = vpack.c.b16 %v1271_v40, %v1264_v37 }
 0x69c   :  { %1535 = vmatmul.mubr.bf16.vlgmr.msra.gmra.mxu0 %v1272_v25 }
 0x75c   :  { %v1356_v1 = vpop.f32.mrf.mxu0 }
 0x75d   :  { %1365 = vrot.lane.b32.xlu1 %v1356_v1, %s1637_s16 }
 0x75e   :  { %v1536_v2 = vpop.f32.mrf.mxu0 }
 0x760   :  { %v1359_v17 = vpop.f32.mrf.mxu0 }
 0x761   :  { %1367 = vrot.lane.b32.xlu0 %v1359_v17, %s1637_s16 }
 0x762   :  { %v1537_v3 = vpop.f32.mrf.mxu0 }
 0x7cf   :  { %v1366_v16 = vpop.permute.xlu1 %1365 }
 0x7d0   :  { %v1371_v9 = vmax.f32 %v1356_v1, %v1366_v16 }
 0x7d3   :  { %v1368_v8 = vpop.permute.xlu0 %1367 }
 0x7d4   :  { %v1372_v4 = vmax.f32 %v1359_v17, %v1368_v8 }
 0x7d6   :  { %1374 = vrot.lane.b32.xlu0 %v1372_v4, %s1637_s16 }
 0x848   :  { %v1375_v10 = vpop.permute.xlu0 %1374 }
 0x849   :  { %v1377_v6 = vsel %vm150_vm0, %v1371_v9, %v1375_v10 }
 0x84a   :  { %1378 = vst [vmem:[%s2129_s8] sm:$0xff] %v1377_v6 }

</bundles_post_ra>
